<compile_context>
chip_gen: v7x
topology: tpu7x:2x2x1
jax: 0.10.0
libtpu: 0.0.40
codegen_flags: <defaults>
</compile_context>

<pallas_src>
import math

import jax
import jax.numpy as jnp
import numpy as np
from jax import lax
from jax.experimental import pallas as pl
from jax.experimental.pallas import tpu as pltpu

# ----- small, forward-consistent hyperparameters -----
D_MODEL = 32          # must be divisible by NUM_HEADS
HIDDEN_DIM = 64
NUM_HEADS = 2
NUM_LAYERS = 2        # encoder builds (num_layers - 1) = 1 EncoderBlock
SEQ_LEN = 8
BATCH = 2
VOCAB = 50
HEAD_DIM = D_MODEL // NUM_HEADS
M = BATCH * SEQ_LEN   # flattened token count
LN_EPS = 1e-5
BIAS_W = max(3 * D_MODEL, HIDDEN_DIM)   # lane width of the bias/LN slab (=96)


def _layer_norm(x, gamma, beta):
    # LayerNorm over last dim, PyTorch default eps=1e-5 (biased variance).
    mean = jnp.mean(x, axis=-1, keepdims=True)
    var = jnp.mean((x - mean) ** 2, axis=-1, keepdims=True)
    return (x - mean) * lax.rsqrt(var + LN_EPS) * gamma + beta


def encoder_kernel(
    ids_ref,                       # SMEM (B, S) int32  — scalar-prefetched
    emb_ref,                       # (VOCAB, D) embedding table
    pos_ref,                       # (S, D) positional encoding
    wqkv_ref,                      # (D, 3D)  [Wq | Wk | Wv]
    wo_ref,                        # (D, D)
    w1_ref,                        # (D, HIDDEN)
    w2_ref,                        # (HIDDEN, D)
    bias_ref,                      # (6, BIAS_W): bqkv | bo | b1 | b2 | ln_g | ln_b
    o_ref,                         # (M, D) output
    x_scr,                         # VMEM (M, D) scratch — embedded input
    attn_scr,                      # VMEM (M, D) scratch — per-head outputs
):
    # ---- fused embedding gather + positional encoding (was XLA glue) ----
    for i in range(M):                       # static unroll, 16 rows
        b, s = divmod(i, SEQ_LEN)
        tok = ids_ref[b, s]
        x_scr[i:i + 1, :] = emb_ref[pl.ds(tok, 1), :] + pos_ref[s:s + 1, :]
    x = x_scr[...]                           # (M, D)

    bias = bias_ref[...]
    b_qkv = bias[0:1, :3 * D_MODEL]
    b_o = bias[1:2, :D_MODEL]
    b_1 = bias[2:3, :HIDDEN_DIM]
    b_2 = bias[3:4, :D_MODEL]
    ln_g = bias[4:5, :D_MODEL]
    ln_b = bias[5:6, :D_MODEL]

    # ---- fused Q/K/V projection: one (M,D)@(D,3D) matmul ----
    qkv = jnp.dot(x, wqkv_ref[...], preferred_element_type=jnp.float32) + b_qkv

    # ---- multi-head self attention (per batch element; no cross-batch mix) --
    scale = 1.0 / math.sqrt(HEAD_DIM)
    for b in range(BATCH):                   # static unroll
        r0 = b * SEQ_LEN
        for h in range(NUM_HEADS):
            c0 = h * HEAD_DIM
            qh = qkv[r0:r0 + SEQ_LEN, c0:c0 + HEAD_DIM]
            kh = qkv[r0:r0 + SEQ_LEN, D_MODEL + c0:D_MODEL + c0 + HEAD_DIM]
            vh = qkv[r0:r0 + SEQ_LEN, 2 * D_MODEL + c0:2 * D_MODEL + c0 + HEAD_DIM]
            scores = lax.dot_general(
                qh, kh, (((1,), (1,)), ((), ())),
                preferred_element_type=jnp.float32) * scale      # q @ k^T
            scores = scores - jnp.max(scores, axis=-1, keepdims=True)
            e = jnp.exp(scores)
            inv = pl.reciprocal(jnp.sum(e, axis=-1, keepdims=True), approx=True)
            attn = e * inv                                        # softmax
            # write head output into its static lane slice (no concat)
            attn_scr[r0:r0 + SEQ_LEN, c0:c0 + HEAD_DIM] = jnp.dot(
                attn, vh, preferred_element_type=jnp.float32)

    attn_out = jnp.dot(attn_scr[...], wo_ref[...],
                       preferred_element_type=jnp.float32) + b_o

    # ---- add & layer-norm #1 (shared LN params, as in the PyTorch module) ---
    norm1 = _layer_norm(x + attn_out, ln_g, ln_b)

    # ---- FFN (dropout = identity, eval mode) ----
    hid = jnp.maximum(
        jnp.dot(norm1, w1_ref[...], preferred_element_type=jnp.float32) + b_1,
        0.0)
    ffn = jnp.dot(hid, w2_ref[...], preferred_element_type=jnp.float32) + b_2

    # ---- add & layer-norm #2 (same LayerNorm instance reused) ----
    o_ref[...] = _layer_norm(norm1 + ffn, ln_g, ln_b)


def encoder_forward_pallas(token_ids, packed):
    def full2d(shape):
        return pl.BlockSpec(shape, lambda i, ids: (0, 0))

    out_flat = pl.pallas_call(
        encoder_kernel,
        out_shape=jax.ShapeDtypeStruct((M, D_MODEL), jnp.float32),
        grid_spec=pltpu.PrefetchScalarGridSpec(
            num_scalar_prefetch=1,          # token ids -> SMEM
            grid=(1,),                      # single invocation, batch flattened
            in_specs=[
                full2d((VOCAB, D_MODEL)),
                full2d((SEQ_LEN, D_MODEL)),
                full2d((D_MODEL, 3 * D_MODEL)),
                full2d((D_MODEL, D_MODEL)),
                full2d((D_MODEL, HIDDEN_DIM)),
                full2d((HIDDEN_DIM, D_MODEL)),
                full2d((6, BIAS_W)),
            ],
            out_specs=full2d((M, D_MODEL)),
            scratch_shapes=[pltpu.VMEM((M, D_MODEL), jnp.float32),
                            pltpu.VMEM((M, D_MODEL), jnp.float32)],
        ),
        compiler_params=pltpu.CompilerParams(
            dimension_semantics=("arbitrary",)),
    )(token_ids, packed["emb"], packed["pos"], packed["wqkv"], packed["wo"],
      packed["w1"], packed["w2"], packed["bias"])
    return out_flat.reshape(BATCH, SEQ_LEN, D_MODEL)


@jax.jit
def encoder_forward(token_ids, packed):
    # num_layers - 1 = 1 EncoderBlock; embedding + pos-enc + the block are all
    # fused in one pallas_call.
    # TODO(synk): generalizing to >1 blocks needs a separate block-only kernel.
    return encoder_forward_pallas(token_ids, packed)


# ----------------- parameter construction / packing (one-time) -----------------
def make_positional_encoding(seq_len, d_model):
    position = np.arange(0, seq_len, dtype=np.float32)[:, None]
    div_term = np.exp(np.arange(0, d_model, 2, dtype=np.float32)
                      * (-np.log(10000.0) / d_model))
    pe = np.zeros((seq_len, d_model), dtype=np.float32)
    pe[:, 0::2] = np.sin(position * div_term)
    pe[:, 1::2] = np.cos(position * div_term)
    return jnp.asarray(pe)


def init_params(key):
    ks = jax.random.split(key, 13)

    def lin(kw, kb, d_in, d_out):
        # stored as (in, out) so the kernel computes x @ W + b
        w = jax.random.normal(kw, (d_in, d_out), jnp.float32) * 0.02
        b = jax.random.normal(kb, (d_out,), jnp.float32) * 0.02
        return w, b

    p = {}
    p["emb"] = jax.random.normal(ks[0], (VOCAB, D_MODEL), jnp.float32) * 0.02
    p["wq"], p["bq"] = lin(ks[1], ks[2], D_MODEL, D_MODEL)
    p["wk"], p["bk"] = lin(ks[3], ks[4], D_MODEL, D_MODEL)
    p["wv"], p["bv"] = lin(ks[5], ks[6], D_MODEL, D_MODEL)
    p["wo"], p["bo"] = lin(ks[7], ks[8], D_MODEL, D_MODEL)
    p["ln_g"] = jnp.ones((D_MODEL,), jnp.float32)
    p["ln_b"] = jnp.zeros((D_MODEL,), jnp.float32)
    p["w1"], p["b1"] = lin(ks[9], ks[10], D_MODEL, HIDDEN_DIM)
    p["w2"], p["b2"] = lin(ks[11], ks[12], HIDDEN_DIM, D_MODEL)
    return p


def pack_params(p, pos_enc):
    """One-time packing: 14 parameter tensors -> 7 kernel inputs."""
    wqkv = jnp.concatenate([p["wq"], p["wk"], p["wv"]], axis=1)   # (D, 3D)

    def row(v):
        return jnp.zeros((BIAS_W,), jnp.float32).at[:v.shape[0]].set(v)

    bias = jnp.stack([
        jnp.concatenate([p["bq"], p["bk"], p["bv"]]),             # (96,)
        row(p["bo"]), row(p["b1"]), row(p["b2"]),
        row(p["ln_g"]), row(p["ln_b"]),
    ], axis=0)                                                    # (6, 96)
    return {"emb": p["emb"], "pos": pos_enc, "wqkv": wqkv,
            "wo": p["wo"], "w1": p["w1"], "w2": p["w2"], "bias": bias}


# ----------------- pure-JAX reference (eval-mode dropout) -----------------
def encoder_forward_ref(token_ids, p, pos_enc):
    x = jnp.take(p["emb"], token_ids, axis=0) + pos_enc[None, :, :]
    for _ in range(NUM_LAYERS - 1):
        q = x @ p["wq"] + p["bq"]
        k = x @ p["wk"] + p["bk"]
        v = x @ p["wv"] + p["bv"]
        B, S, D = x.shape
        qh = q.reshape(B, S, NUM_HEADS, HEAD_DIM).transpose(0, 2, 1, 3)
        kh = k.reshape(B, S, NUM_HEADS, HEAD_DIM).transpose(0, 2, 1, 3)
        vh = v.reshape(B, S, NUM_HEADS, HEAD_DIM).transpose(0, 2, 1, 3)
        scores = jnp.einsum("bhqd,bhkd->bhqk", qh, kh) / math.sqrt(HEAD_DIM)
        attn = jax.nn.softmax(scores, axis=-1)
        o = jnp.einsum("bhqk,bhkd->bhqd", attn, vh).transpose(0, 2, 1, 3)
        o = o.reshape(B, S, D) @ p["wo"] + p["bo"]
        n1 = _layer_norm(x + o, p["ln_g"], p["ln_b"])
        ff = jnp.maximum(n1 @ p["w1"] + p["b1"], 0.0) @ p["w2"] + p["b2"]
        x = _layer_norm(n1 + ff, p["ln_g"], p["ln_b"])
    return x


if __name__ == "__main__":
    key = jax.random.PRNGKey(0)
    k_tok, k_par = jax.random.split(key)
    token_ids = jax.random.randint(k_tok, (BATCH, SEQ_LEN), 0, VOCAB,
                                   dtype=jnp.int32)
    params = init_params(k_par)
    pos_enc = make_positional_encoding(SEQ_LEN, D_MODEL)
    packed = pack_params(params, pos_enc)

    out = jax.block_until_ready(encoder_forward(token_ids, packed))
    ref = encoder_forward_ref(token_ids, params, pos_enc)
    # tolerance loosened slightly to absorb the approx (EUP) reciprocal in the
    # in-kernel softmax; a structural bug would produce O(0.1-1) errors.
    np.testing.assert_allclose(np.asarray(out), np.asarray(ref),
                               rtol=5e-3, atol=5e-3)
    print("KERNEL_OK")
</pallas_src>

<mosaic_0001>
module attributes {stable_mosaic.version = 11 : i64} {
  func.func @encoder_kernel(%arg0: i32, %arg1: memref<2x8xi32, #tpu.memory_space<smem>>, %arg2: memref<50x32xf32, #tpu.memory_space<vmem>>, %arg3: memref<8x32xf32, #tpu.memory_space<vmem>>, %arg4: memref<32x96xf32, #tpu.memory_space<vmem>>, %arg5: memref<32x32xf32, #tpu.memory_space<vmem>>, %arg6: memref<32x64xf32, #tpu.memory_space<vmem>>, %arg7: memref<64x32xf32, #tpu.memory_space<vmem>>, %arg8: memref<6x96xf32, #tpu.memory_space<vmem>>, %arg9: memref<16x32xf32, #tpu.memory_space<vmem>>, %arg10: memref<16x32xf32, #tpu.memory_space<vmem>>, %arg11: memref<16x32xf32, #tpu.memory_space<vmem>>) attributes {dimension_semantics = [#tpu.dimension_semantics<arbitrary>], iteration_bounds = array<i64: 1>, scalar_prefetch = 1 : i64, scratch_operands = 2 : i64, tpu.core_type = #tpu.core_type<tc>, window_params = [{pipeline_mode = #tpu.pipeline_mode<synchronous>, transform_indices = @transform_0, window_bounds = array<i64: 50, 32>}, {pipeline_mode = #tpu.pipeline_mode<synchronous>, transform_indices = @transform_1, window_bounds = array<i64: 8, 32>}, {pipeline_mode = #tpu.pipeline_mode<synchronous>, transform_indices = @transform_2, window_bounds = array<i64: 32, 96>}, {pipeline_mode = #tpu.pipeline_mode<synchronous>, transform_indices = @transform_3, window_bounds = array<i64: 32, 32>}, {pipeline_mode = #tpu.pipeline_mode<synchronous>, transform_indices = @transform_4, window_bounds = array<i64: 32, 64>}, {pipeline_mode = #tpu.pipeline_mode<synchronous>, transform_indices = @transform_5, window_bounds = array<i64: 64, 32>}, {pipeline_mode = #tpu.pipeline_mode<synchronous>, transform_indices = @transform_6, window_bounds = array<i64: 6, 96>}, {pipeline_mode = #tpu.pipeline_mode<synchronous>, transform_indices = @transform_7, window_bounds = array<i64: 16, 32>}]} {
    %c0 = arith.constant 0 : index
    %c0_0 = arith.constant 0 : index
    %0 = memref.load %arg1[%c0, %c0_0] : memref<2x8xi32, #tpu.memory_space<smem>>
    %1 = arith.index_cast %0 : i32 to index
    %c0_1 = arith.constant 0 : index
    %2 = vector.load %arg2[%1, %c0_1] : memref<50x32xf32, #tpu.memory_space<vmem>>, vector<1x32xf32>
    %c0_2 = arith.constant 0 : index
    %c0_3 = arith.constant 0 : index
    %3 = vector.load %arg3[%c0_2, %c0_3] : memref<8x32xf32, #tpu.memory_space<vmem>>, vector<1x32xf32>
    %4 = arith.addf %2, %3 : vector<1x32xf32>
    %c0_4 = arith.constant 0 : index
    %c0_5 = arith.constant 0 : index
    %5 = vector.load %arg10[%c0_4, %c0_5] : memref<16x32xf32, #tpu.memory_space<vmem>>, vector<1x32xf32>
    tpu.vector_store %arg10[%c0_4, %c0_5], %4 {strides = array<i32>} : memref<16x32xf32, #tpu.memory_space<vmem>>, vector<1x32xf32>,
    %c0_6 = arith.constant 0 : index
    %c1 = arith.constant 1 : index
    %6 = memref.load %arg1[%c0_6, %c1] : memref<2x8xi32, #tpu.memory_space<smem>>
    %7 = arith.index_cast %6 : i32 to index
    %c0_7 = arith.constant 0 : index
    %8 = vector.load %arg2[%7, %c0_7] : memref<50x32xf32, #tpu.memory_space<vmem>>, vector<1x32xf32>
    %c1_8 = arith.constant 1 : index
    %c0_9 = arith.constant 0 : index
    %9 = vector.load %arg3[%c1_8, %c0_9] : memref<8x32xf32, #tpu.memory_space<vmem>>, vector<1x32xf32>
    %10 = arith.addf %8, %9 : vector<1x32xf32>
    %c1_10 = arith.constant 1 : index
    %c0_11 = arith.constant 0 : index
    %11 = vector.load %arg10[%c1_10, %c0_11] : memref<16x32xf32, #tpu.memory_space<vmem>>, vector<1x32xf32>
    tpu.vector_store %arg10[%c1_10, %c0_11], %10 {strides = array<i32>} : memref<16x32xf32, #tpu.memory_space<vmem>>, vector<1x32xf32>,
    %c0_12 = arith.constant 0 : index
    %c2 = arith.constant 2 : index
    %12 = memref.load %arg1[%c0_12, %c2] : memref<2x8xi32, #tpu.memory_space<smem>>
    %13 = arith.index_cast %12 : i32 to index
    %c0_13 = arith.constant 0 : index
    %14 = vector.load %arg2[%13, %c0_13] : memref<50x32xf32, #tpu.memory_space<vmem>>, vector<1x32xf32>
    %c2_14 = arith.constant 2 : index
    %c0_15 = arith.constant 0 : index
    %15 = vector.load %arg3[%c2_14, %c0_15] : memref<8x32xf32, #tpu.memory_space<vmem>>, vector<1x32xf32>
    %16 = arith.addf %14, %15 : vector<1x32xf32>
    %c2_16 = arith.constant 2 : index
    %c0_17 = arith.constant 0 : index
    %17 = vector.load %arg10[%c2_16, %c0_17] : memref<16x32xf32, #tpu.memory_space<vmem>>, vector<1x32xf32>
    tpu.vector_store %arg10[%c2_16, %c0_17], %16 {strides = array<i32>} : memref<16x32xf32, #tpu.memory_space<vmem>>, vector<1x32xf32>,
    %c0_18 = arith.constant 0 : index
    %c3 = arith.constant 3 : index
    %18 = memref.load %arg1[%c0_18, %c3] : memref<2x8xi32, #tpu.memory_space<smem>>
    %19 = arith.index_cast %18 : i32 to index
    %c0_19 = arith.constant 0 : index
    %20 = vector.load %arg2[%19, %c0_19] : memref<50x32xf32, #tpu.memory_space<vmem>>, vector<1x32xf32>
    %c3_20 = arith.constant 3 : index
    %c0_21 = arith.constant 0 : index
    %21 = vector.load %arg3[%c3_20, %c0_21] : memref<8x32xf32, #tpu.memory_space<vmem>>, vector<1x32xf32>
    %22 = arith.addf %20, %21 : vector<1x32xf32>
    %c3_22 = arith.constant 3 : index
    %c0_23 = arith.constant 0 : index
    %23 = vector.load %arg10[%c3_22, %c0_23] : memref<16x32xf32, #tpu.memory_space<vmem>>, vector<1x32xf32>
    tpu.vector_store %arg10[%c3_22, %c0_23], %22 {strides = array<i32>} : memref<16x32xf32, #tpu.memory_space<vmem>>, vector<1x32xf32>,
    %c0_24 = arith.constant 0 : index
    %c4 = arith.constant 4 : index
    %24 = memref.load %arg1[%c0_24, %c4] : memref<2x8xi32, #tpu.memory_space<smem>>
    %25 = arith.index_cast %24 : i32 to index
    %c0_25 = arith.constant 0 : index
    %26 = vector.load %arg2[%25, %c0_25] : memref<50x32xf32, #tpu.memory_space<vmem>>, vector<1x32xf32>
    %c4_26 = arith.constant 4 : index
    %c0_27 = arith.constant 0 : index
    %27 = vector.load %arg3[%c4_26, %c0_27] : memref<8x32xf32, #tpu.memory_space<vmem>>, vector<1x32xf32>
    %28 = arith.addf %26, %27 : vector<1x32xf32>
    %c4_28 = arith.constant 4 : index
    %c0_29 = arith.constant 0 : index
    %29 = vector.load %arg10[%c4_28, %c0_29] : memref<16x32xf32, #tpu.memory_space<vmem>>, vector<1x32xf32>
    tpu.vector_store %arg10[%c4_28, %c0_29], %28 {strides = array<i32>} : memref<16x32xf32, #tpu.memory_space<vmem>>, vector<1x32xf32>,
    %c0_30 = arith.constant 0 : index
    %c5 = arith.constant 5 : index
    %30 = memref.load %arg1[%c0_30, %c5] : memref<2x8xi32, #tpu.memory_space<smem>>
    %31 = arith.index_cast %30 : i32 to index
    %c0_31 = arith.constant 0 : index
    %32 = vector.load %arg2[%31, %c0_31] : memref<50x32xf32, #tpu.memory_space<vmem>>, vector<1x32xf32>
    %c5_32 = arith.constant 5 : index
    %c0_33 = arith.constant 0 : index
    %33 = vector.load %arg3[%c5_32, %c0_33] : memref<8x32xf32, #tpu.memory_space<vmem>>, vector<1x32xf32>
    %34 = arith.addf %32, %33 : vector<1x32xf32>
    %c5_34 = arith.constant 5 : index
    %c0_35 = arith.constant 0 : index
    %35 = vector.load %arg10[%c5_34, %c0_35] : memref<16x32xf32, #tpu.memory_space<vmem>>, vector<1x32xf32>
    tpu.vector_store %arg10[%c5_34, %c0_35], %34 {strides = array<i32>} : memref<16x32xf32, #tpu.memory_space<vmem>>, vector<1x32xf32>,
    %c0_36 = arith.constant 0 : index
    %c6 = arith.constant 6 : index
    %36 = memref.load %arg1[%c0_36, %c6] : memref<2x8xi32, #tpu.memory_space<smem>>
    %37 = arith.index_cast %36 : i32 to index
    %c0_37 = arith.constant 0 : index
    %38 = vector.load %arg2[%37, %c0_37] : memref<50x32xf32, #tpu.memory_space<vmem>>, vector<1x32xf32>
    %c6_38 = arith.constant 6 : index
    %c0_39 = arith.constant 0 : index
    %39 = vector.load %arg3[%c6_38, %c0_39] : memref<8x32xf32, #tpu.memory_space<vmem>>, vector<1x32xf32>
    %40 = arith.addf %38, %39 : vector<1x32xf32>
    %c6_40 = arith.constant 6 : index
    %c0_41 = arith.constant 0 : index
    %41 = vector.load %arg10[%c6_40, %c0_41] : memref<16x32xf32, #tpu.memory_space<vmem>>, vector<1x32xf32>
    tpu.vector_store %arg10[%c6_40, %c0_41], %40 {strides = array<i32>} : memref<16x32xf32, #tpu.memory_space<vmem>>, vector<1x32xf32>,
    %c0_42 = arith.constant 0 : index
    %c7 = arith.constant 7 : index
    %42 = memref.load %arg1[%c0_42, %c7] : memref<2x8xi32, #tpu.memory_space<smem>>
    %43 = arith.index_cast %42 : i32 to index
    %c0_43 = arith.constant 0 : index
    %44 = vector.load %arg2[%43, %c0_43] : memref<50x32xf32, #tpu.memory_space<vmem>>, vector<1x32xf32>
    %c7_44 = arith.constant 7 : index
    %c0_45 = arith.constant 0 : index
    %45 = vector.load %arg3[%c7_44, %c0_45] : memref<8x32xf32, #tpu.memory_space<vmem>>, vector<1x32xf32>
    %46 = arith.addf %44, %45 : vector<1x32xf32>
    %c7_46 = arith.constant 7 : index
    %c0_47 = arith.constant 0 : index
    %47 = vector.load %arg10[%c7_46, %c0_47] : memref<16x32xf32, #tpu.memory_space<vmem>>, vector<1x32xf32>
    tpu.vector_store %arg10[%c7_46, %c0_47], %46 {strides = array<i32>} : memref<16x32xf32, #tpu.memory_space<vmem>>, vector<1x32xf32>,
    %c1_48 = arith.constant 1 : index
    %c0_49 = arith.constant 0 : index
    %48 = memref.load %arg1[%c1_48, %c0_49] : memref<2x8xi32, #tpu.memory_space<smem>>
    %49 = arith.index_cast %48 : i32 to index
    %c0_50 = arith.constant 0 : index
    %50 = vector.load %arg2[%49, %c0_50] : memref<50x32xf32, #tpu.memory_space<vmem>>, vector<1x32xf32>
    %c0_51 = arith.constant 0 : index
    %c0_52 = arith.constant 0 : index
    %51 = vector.load %arg3[%c0_51, %c0_52] : memref<8x32xf32, #tpu.memory_space<vmem>>, vector<1x32xf32>
    %52 = arith.addf %50, %51 : vector<1x32xf32>
    %c8 = arith.constant 8 : index
    %c0_53 = arith.constant 0 : index
    %53 = vector.load %arg10[%c8, %c0_53] : memref<16x32xf32, #tpu.memory_space<vmem>>, vector<1x32xf32>
    tpu.vector_store %arg10[%c8, %c0_53], %52 {strides = array<i32>} : memref<16x32xf32, #tpu.memory_space<vmem>>, vector<1x32xf32>,
    %c1_54 = arith.constant 1 : index
    %c1_55 = arith.constant 1 : index
    %54 = memref.load %arg1[%c1_54, %c1_55] : memref<2x8xi32, #tpu.memory_space<smem>>
    %55 = arith.index_cast %54 : i32 to index
    %c0_56 = arith.constant 0 : index
    %56 = vector.load %arg2[%55, %c0_56] : memref<50x32xf32, #tpu.memory_space<vmem>>, vector<1x32xf32>
    %c1_57 = arith.constant 1 : index
    %c0_58 = arith.constant 0 : index
    %57 = vector.load %arg3[%c1_57, %c0_58] : memref<8x32xf32, #tpu.memory_space<vmem>>, vector<1x32xf32>
    %58 = arith.addf %56, %57 : vector<1x32xf32>
    %c9 = arith.constant 9 : index
    %c0_59 = arith.constant 0 : index
    %59 = vector.load %arg10[%c9, %c0_59] : memref<16x32xf32, #tpu.memory_space<vmem>>, vector<1x32xf32>
    tpu.vector_store %arg10[%c9, %c0_59], %58 {strides = array<i32>} : memref<16x32xf32, #tpu.memory_space<vmem>>, vector<1x32xf32>,
    %c1_60 = arith.constant 1 : index
    %c2_61 = arith.constant 2 : index
    %60 = memref.load %arg1[%c1_60, %c2_61] : memref<2x8xi32, #tpu.memory_space<smem>>
    %61 = arith.index_cast %60 : i32 to index
    %c0_62 = arith.constant 0 : index
    %62 = vector.load %arg2[%61, %c0_62] : memref<50x32xf32, #tpu.memory_space<vmem>>, vector<1x32xf32>
    %c2_63 = arith.constant 2 : index
    %c0_64 = arith.constant 0 : index
    %63 = vector.load %arg3[%c2_63, %c0_64] : memref<8x32xf32, #tpu.memory_space<vmem>>, vector<1x32xf32>
    %64 = arith.addf %62, %63 : vector<1x32xf32>
    %c10 = arith.constant 10 : index
    %c0_65 = arith.constant 0 : index
    %65 = vector.load %arg10[%c10, %c0_65] : memref<16x32xf32, #tpu.memory_space<vmem>>, vector<1x32xf32>
    tpu.vector_store %arg10[%c10, %c0_65], %64 {strides = array<i32>} : memref<16x32xf32, #tpu.memory_space<vmem>>, vector<1x32xf32>,
    %c1_66 = arith.constant 1 : index
    %c3_67 = arith.constant 3 : index
    %66 = memref.load %arg1[%c1_66, %c3_67] : memref<2x8xi32, #tpu.memory_space<smem>>
    %67 = arith.index_cast %66 : i32 to index
    %c0_68 = arith.constant 0 : index
    %68 = vector.load %arg2[%67, %c0_68] : memref<50x32xf32, #tpu.memory_space<vmem>>, vector<1x32xf32>
    %c3_69 = arith.constant 3 : index
    %c0_70 = arith.constant 0 : index
    %69 = vector.load %arg3[%c3_69, %c0_70] : memref<8x32xf32, #tpu.memory_space<vmem>>, vector<1x32xf32>
    %70 = arith.addf %68, %69 : vector<1x32xf32>
    %c11 = arith.constant 11 : index
    %c0_71 = arith.constant 0 : index
    %71 = vector.load %arg10[%c11, %c0_71] : memref<16x32xf32, #tpu.memory_space<vmem>>, vector<1x32xf32>
    tpu.vector_store %arg10[%c11, %c0_71], %70 {strides = array<i32>} : memref<16x32xf32, #tpu.memory_space<vmem>>, vector<1x32xf32>,
    %c1_72 = arith.constant 1 : index
    %c4_73 = arith.constant 4 : index
    %72 = memref.load %arg1[%c1_72, %c4_73] : memref<2x8xi32, #tpu.memory_space<smem>>
    %73 = arith.index_cast %72 : i32 to index
    %c0_74 = arith.constant 0 : index
    %74 = vector.load %arg2[%73, %c0_74] : memref<50x32xf32, #tpu.memory_space<vmem>>, vector<1x32xf32>
    %c4_75 = arith.constant 4 : index
    %c0_76 = arith.constant 0 : index
    %75 = vector.load %arg3[%c4_75, %c0_76] : memref<8x32xf32, #tpu.memory_space<vmem>>, vector<1x32xf32>
    %76 = arith.addf %74, %75 : vector<1x32xf32>
    %c12 = arith.constant 12 : index
    %c0_77 = arith.constant 0 : index
    %77 = vector.load %arg10[%c12, %c0_77] : memref<16x32xf32, #tpu.memory_space<vmem>>, vector<1x32xf32>
    tpu.vector_store %arg10[%c12, %c0_77], %76 {strides = array<i32>} : memref<16x32xf32, #tpu.memory_space<vmem>>, vector<1x32xf32>,
    %c1_78 = arith.constant 1 : index
    %c5_79 = arith.constant 5 : index
    %78 = memref.load %arg1[%c1_78, %c5_79] : memref<2x8xi32, #tpu.memory_space<smem>>
    %79 = arith.index_cast %78 : i32 to index
    %c0_80 = arith.constant 0 : index
    %80 = vector.load %arg2[%79, %c0_80] : memref<50x32xf32, #tpu.memory_space<vmem>>, vector<1x32xf32>
    %c5_81 = arith.constant 5 : index
    %c0_82 = arith.constant 0 : index
    %81 = vector.load %arg3[%c5_81, %c0_82] : memref<8x32xf32, #tpu.memory_space<vmem>>, vector<1x32xf32>
    %82 = arith.addf %80, %81 : vector<1x32xf32>
    %c13 = arith.constant 13 : index
    %c0_83 = arith.constant 0 : index
    %83 = vector.load %arg10[%c13, %c0_83] : memref<16x32xf32, #tpu.memory_space<vmem>>, vector<1x32xf32>
    tpu.vector_store %arg10[%c13, %c0_83], %82 {strides = array<i32>} : memref<16x32xf32, #tpu.memory_space<vmem>>, vector<1x32xf32>,
    %c1_84 = arith.constant 1 : index
    %c6_85 = arith.constant 6 : index
    %84 = memref.load %arg1[%c1_84, %c6_85] : memref<2x8xi32, #tpu.memory_space<smem>>
    %85 = arith.index_cast %84 : i32 to index
    %c0_86 = arith.constant 0 : index
    %86 = vector.load %arg2[%85, %c0_86] : memref<50x32xf32, #tpu.memory_space<vmem>>, vector<1x32xf32>
    %c6_87 = arith.constant 6 : index
    %c0_88 = arith.constant 0 : index
    %87 = vector.load %arg3[%c6_87, %c0_88] : memref<8x32xf32, #tpu.memory_space<vmem>>, vector<1x32xf32>
    %88 = arith.addf %86, %87 : vector<1x32xf32>
    %c14 = arith.constant 14 : index
    %c0_89 = arith.constant 0 : index
    %89 = vector.load %arg10[%c14, %c0_89] : memref<16x32xf32, #tpu.memory_space<vmem>>, vector<1x32xf32>
    tpu.vector_store %arg10[%c14, %c0_89], %88 {strides = array<i32>} : memref<16x32xf32, #tpu.memory_space<vmem>>, vector<1x32xf32>,
    %c1_90 = arith.constant 1 : index
    %c7_91 = arith.constant 7 : index
    %90 = memref.load %arg1[%c1_90, %c7_91] : memref<2x8xi32, #tpu.memory_space<smem>>
    %91 = arith.index_cast %90 : i32 to index
    %c0_92 = arith.constant 0 : index
    %92 = vector.load %arg2[%91, %c0_92] : memref<50x32xf32, #tpu.memory_space<vmem>>, vector<1x32xf32>
    %c7_93 = arith.constant 7 : index
    %c0_94 = arith.constant 0 : index
    %93 = vector.load %arg3[%c7_93, %c0_94] : memref<8x32xf32, #tpu.memory_space<vmem>>, vector<1x32xf32>
    %94 = arith.addf %92, %93 : vector<1x32xf32>
    %c15 = arith.constant 15 : index
    %c0_95 = arith.constant 0 : index
    %95 = vector.load %arg10[%c15, %c0_95] : memref<16x32xf32, #tpu.memory_space<vmem>>, vector<1x32xf32>
    tpu.vector_store %arg10[%c15, %c0_95], %94 {strides = array<i32>} : memref<16x32xf32, #tpu.memory_space<vmem>>, vector<1x32xf32>,
    %c0_96 = arith.constant 0 : index
    %c0_97 = arith.constant 0 : index
    %96 = vector.load %arg10[%c0_96, %c0_97] : memref<16x32xf32, #tpu.memory_space<vmem>>, vector<16x32xf32>
    %c0_98 = arith.constant 0 : index
    %c0_99 = arith.constant 0 : index
    %97 = vector.load %arg8[%c0_98, %c0_99] : memref<6x96xf32, #tpu.memory_space<vmem>>, vector<6x96xf32>
    %98 = vector.extract_strided_slice %97 {offsets = [0, 0], sizes = [1, 96], strides = [1, 1]} : vector<6x96xf32> to vector<1x96xf32>
    %99 = vector.extract_strided_slice %97 {offsets = [1, 0], sizes = [1, 32], strides = [1, 1]} : vector<6x96xf32> to vector<1x32xf32>
    %100 = vector.extract_strided_slice %97 {offsets = [2, 0], sizes = [1, 64], strides = [1, 1]} : vector<6x96xf32> to vector<1x64xf32>
    %101 = vector.extract_strided_slice %97 {offsets = [3, 0], sizes = [1, 32], strides = [1, 1]} : vector<6x96xf32> to vector<1x32xf32>
    %102 = vector.extract_strided_slice %97 {offsets = [4, 0], sizes = [1, 32], strides = [1, 1]} : vector<6x96xf32> to vector<1x32xf32>
    %103 = vector.extract_strided_slice %97 {offsets = [5, 0], sizes = [1, 32], strides = [1, 1]} : vector<6x96xf32> to vector<1x32xf32>
    %c0_100 = arith.constant 0 : index
    %c0_101 = arith.constant 0 : index
    %104 = vector.load %arg4[%c0_100, %c0_101] : memref<32x96xf32, #tpu.memory_space<vmem>>, vector<32x96xf32>
    %cst = arith.constant dense<0.000000e+00> : vector<16x96xf32>
    %105 = tpu.matmul %96, %104, %cst {dimension_numbers = #tpu.dot_dimension_numbers<[1], [0], [0], [1], [0, 0, 1, 1], [], []>} : vector<16x32xf32>, vector<32x96xf32>, vector<16x96xf32> -> vector<16x96xf32>
    %106 = vector.broadcast %98 : vector<1x96xf32> to vector<16x96xf32>
    %107 = arith.addf %105, %106 : vector<16x96xf32>
    %108 = vector.extract_strided_slice %107 {offsets = [0, 0], sizes = [8, 16], strides = [1, 1]} : vector<16x96xf32> to vector<8x16xf32>
    %109 = vector.extract_strided_slice %107 {offsets = [0, 32], sizes = [8, 16], strides = [1, 1]} : vector<16x96xf32> to vector<8x16xf32>
    %110 = vector.extract_strided_slice %107 {offsets = [0, 64], sizes = [8, 16], strides = [1, 1]} : vector<16x96xf32> to vector<8x16xf32>
    %cst_102 = arith.constant dense<0.000000e+00> : vector<8x8xf32>
    %111 = tpu.matmul %108, %109, %cst_102 {dimension_numbers = #tpu.dot_dimension_numbers<[1], [1], [0], [0], [0, 0, 1, 0], [], []>} : vector<8x16xf32>, vector<8x16xf32>, vector<8x8xf32> -> vector<8x8xf32>
    %cst_103 = arith.constant 2.500000e-01 : f32
    %112 = vector.broadcast %cst_103 : f32 to vector<8x8xf32>
    %113 = arith.mulf %111, %112 : vector<8x8xf32>
    %cst_104 = arith.constant dense<0xFF800000> : vector<8xf32>
    %114 = vector.multi_reduction <maximumf>, %113, %cst_104 [1] : vector<8x8xf32> to vector<8xf32>
    %115 = vector.shape_cast %114 : vector<8xf32> to vector<8x1xf32>
    %116 = vector.broadcast %115 : vector<8x1xf32> to vector<8x8xf32>
    %117 = arith.subf %113, %116 : vector<8x8xf32>
    %118 = math.exp %117 : vector<8x8xf32>
    %cst_105 = arith.constant dense<0.000000e+00> : vector<8xf32>
    %119 = vector.multi_reduction <add>, %118, %cst_105 [1] : vector<8x8xf32> to vector<8xf32>
    %120 = vector.shape_cast %119 : vector<8xf32> to vector<8x1xf32>
    %121 = tpu.reciprocal %120 {approx = true} : vector<8x1xf32> -> vector<8x1xf32>
    %122 = vector.broadcast %121 : vector<8x1xf32> to vector<8x8xf32>
    %123 = arith.mulf %118, %122 : vector<8x8xf32>
    %cst_106 = arith.constant dense<0.000000e+00> : vector<8x16xf32>
    %124 = tpu.matmul %123, %110, %cst_106 {dimension_numbers = #tpu.dot_dimension_numbers<[1], [0], [0], [1], [0, 0, 1, 1], [], []>} : vector<8x8xf32>, vector<8x16xf32>, vector<8x16xf32> -> vector<8x16xf32>
    %c0_107 = arith.constant 0 : index
    %c0_108 = arith.constant 0 : index
    %125 = vector.load %arg11[%c0_107, %c0_108] : memref<16x32xf32, #tpu.memory_space<vmem>>, vector<8x16xf32>
    tpu.vector_store %arg11[%c0_107, %c0_108], %124 {strides = array<i32>} : memref<16x32xf32, #tpu.memory_space<vmem>>, vector<8x16xf32>,
    %126 = vector.extract_strided_slice %107 {offsets = [0, 16], sizes = [8, 16], strides = [1, 1]} : vector<16x96xf32> to vector<8x16xf32>
    %127 = vector.extract_strided_slice %107 {offsets = [0, 48], sizes = [8, 16], strides = [1, 1]} : vector<16x96xf32> to vector<8x16xf32>
    %128 = vector.extract_strided_slice %107 {offsets = [0, 80], sizes = [8, 16], strides = [1, 1]} : vector<16x96xf32> to vector<8x16xf32>
    %cst_109 = arith.constant dense<0.000000e+00> : vector<8x8xf32>
    %129 = tpu.matmul %126, %127, %cst_109 {dimension_numbers = #tpu.dot_dimension_numbers<[1], [1], [0], [0], [0, 0, 1, 0], [], []>} : vector<8x16xf32>, vector<8x16xf32>, vector<8x8xf32> -> vector<8x8xf32>
    %cst_110 = arith.constant 2.500000e-01 : f32
    %130 = vector.broadcast %cst_110 : f32 to vector<8x8xf32>
    %131 = arith.mulf %129, %130 : vector<8x8xf32>
    %cst_111 = arith.constant dense<0xFF800000> : vector<8xf32>
    %132 = vector.multi_reduction <maximumf>, %131, %cst_111 [1] : vector<8x8xf32> to vector<8xf32>
    %133 = vector.shape_cast %132 : vector<8xf32> to vector<8x1xf32>
    %134 = vector.broadcast %133 : vector<8x1xf32> to vector<8x8xf32>
    %135 = arith.subf %131, %134 : vector<8x8xf32>
    %136 = math.exp %135 : vector<8x8xf32>
    %cst_112 = arith.constant dense<0.000000e+00> : vector<8xf32>
    %137 = vector.multi_reduction <add>, %136, %cst_112 [1] : vector<8x8xf32> to vector<8xf32>
    %138 = vector.shape_cast %137 : vector<8xf32> to vector<8x1xf32>
    %139 = tpu.reciprocal %138 {approx = true} : vector<8x1xf32> -> vector<8x1xf32>
    %140 = vector.broadcast %139 : vector<8x1xf32> to vector<8x8xf32>
    %141 = arith.mulf %136, %140 : vector<8x8xf32>
    %cst_113 = arith.constant dense<0.000000e+00> : vector<8x16xf32>
    %142 = tpu.matmul %141, %128, %cst_113 {dimension_numbers = #tpu.dot_dimension_numbers<[1], [0], [0], [1], [0, 0, 1, 1], [], []>} : vector<8x8xf32>, vector<8x16xf32>, vector<8x16xf32> -> vector<8x16xf32>
    %c0_114 = arith.constant 0 : index
    %c16 = arith.constant 16 : index
    %143 = vector.load %arg11[%c0_114, %c16] : memref<16x32xf32, #tpu.memory_space<vmem>>, vector<8x16xf32>
    tpu.vector_store %arg11[%c0_114, %c16], %142 {strides = array<i32>} : memref<16x32xf32, #tpu.memory_space<vmem>>, vector<8x16xf32>,
    %144 = vector.extract_strided_slice %107 {offsets = [8, 0], sizes = [8, 16], strides = [1, 1]} : vector<16x96xf32> to vector<8x16xf32>
    %145 = vector.extract_strided_slice %107 {offsets = [8, 32], sizes = [8, 16], strides = [1, 1]} : vector<16x96xf32> to vector<8x16xf32>
    %146 = vector.extract_strided_slice %107 {offsets = [8, 64], sizes = [8, 16], strides = [1, 1]} : vector<16x96xf32> to vector<8x16xf32>
    %cst_115 = arith.constant dense<0.000000e+00> : vector<8x8xf32>
    %147 = tpu.matmul %144, %145, %cst_115 {dimension_numbers = #tpu.dot_dimension_numbers<[1], [1], [0], [0], [0, 0, 1, 0], [], []>} : vector<8x16xf32>, vector<8x16xf32>, vector<8x8xf32> -> vector<8x8xf32>
    %cst_116 = arith.constant 2.500000e-01 : f32
    %148 = vector.broadcast %cst_116 : f32 to vector<8x8xf32>
    %149 = arith.mulf %147, %148 : vector<8x8xf32>
    %cst_117 = arith.constant dense<0xFF800000> : vector<8xf32>
    %150 = vector.multi_reduction <maximumf>, %149, %cst_117 [1] : vector<8x8xf32> to vector<8xf32>
    %151 = vector.shape_cast %150 : vector<8xf32> to vector<8x1xf32>
    %152 = vector.broadcast %151 : vector<8x1xf32> to vector<8x8xf32>
    %153 = arith.subf %149, %152 : vector<8x8xf32>
    %154 = math.exp %153 : vector<8x8xf32>
    %cst_118 = arith.constant dense<0.000000e+00> : vector<8xf32>
    %155 = vector.multi_reduction <add>, %154, %cst_118 [1] : vector<8x8xf32> to vector<8xf32>
    %156 = vector.shape_cast %155 : vector<8xf32> to vector<8x1xf32>
    %157 = tpu.reciprocal %156 {approx = true} : vector<8x1xf32> -> vector<8x1xf32>
    %158 = vector.broadcast %157 : vector<8x1xf32> to vector<8x8xf32>
    %159 = arith.mulf %154, %158 : vector<8x8xf32>
    %cst_119 = arith.constant dense<0.000000e+00> : vector<8x16xf32>
    %160 = tpu.matmul %159, %146, %cst_119 {dimension_numbers = #tpu.dot_dimension_numbers<[1], [0], [0], [1], [0, 0, 1, 1], [], []>} : vector<8x8xf32>, vector<8x16xf32>, vector<8x16xf32> -> vector<8x16xf32>
    %c8_120 = arith.constant 8 : index
    %c0_121 = arith.constant 0 : index
    %161 = vector.load %arg11[%c8_120, %c0_121] : memref<16x32xf32, #tpu.memory_space<vmem>>, vector<8x16xf32>
    tpu.vector_store %arg11[%c8_120, %c0_121], %160 {strides = array<i32>} : memref<16x32xf32, #tpu.memory_space<vmem>>, vector<8x16xf32>,
    %162 = vector.extract_strided_slice %107 {offsets = [8, 16], sizes = [8, 16], strides = [1, 1]} : vector<16x96xf32> to vector<8x16xf32>
    %163 = vector.extract_strided_slice %107 {offsets = [8, 48], sizes = [8, 16], strides = [1, 1]} : vector<16x96xf32> to vector<8x16xf32>
    %164 = vector.extract_strided_slice %107 {offsets = [8, 80], sizes = [8, 16], strides = [1, 1]} : vector<16x96xf32> to vector<8x16xf32>
    %cst_122 = arith.constant dense<0.000000e+00> : vector<8x8xf32>
    %165 = tpu.matmul %162, %163, %cst_122 {dimension_numbers = #tpu.dot_dimension_numbers<[1], [1], [0], [0], [0, 0, 1, 0], [], []>} : vector<8x16xf32>, vector<8x16xf32>, vector<8x8xf32> -> vector<8x8xf32>
    %cst_123 = arith.constant 2.500000e-01 : f32
    %166 = vector.broadcast %cst_123 : f32 to vector<8x8xf32>
    %167 = arith.mulf %165, %166 : vector<8x8xf32>
    %cst_124 = arith.constant dense<0xFF800000> : vector<8xf32>
    %168 = vector.multi_reduction <maximumf>, %167, %cst_124 [1] : vector<8x8xf32> to vector<8xf32>
    %169 = vector.shape_cast %168 : vector<8xf32> to vector<8x1xf32>
    %170 = vector.broadcast %169 : vector<8x1xf32> to vector<8x8xf32>
    %171 = arith.subf %167, %170 : vector<8x8xf32>
    %172 = math.exp %171 : vector<8x8xf32>
    %cst_125 = arith.constant dense<0.000000e+00> : vector<8xf32>
    %173 = vector.multi_reduction <add>, %172, %cst_125 [1] : vector<8x8xf32> to vector<8xf32>
    %174 = vector.shape_cast %173 : vector<8xf32> to vector<8x1xf32>
    %175 = tpu.reciprocal %174 {approx = true} : vector<8x1xf32> -> vector<8x1xf32>
    %176 = vector.broadcast %175 : vector<8x1xf32> to vector<8x8xf32>
    %177 = arith.mulf %172, %176 : vector<8x8xf32>
    %cst_126 = arith.constant dense<0.000000e+00> : vector<8x16xf32>
    %178 = tpu.matmul %177, %164, %cst_126 {dimension_numbers = #tpu.dot_dimension_numbers<[1], [0], [0], [1], [0, 0, 1, 1], [], []>} : vector<8x8xf32>, vector<8x16xf32>, vector<8x16xf32> -> vector<8x16xf32>
    %c8_127 = arith.constant 8 : index
    %c16_128 = arith.constant 16 : index
    %179 = vector.load %arg11[%c8_127, %c16_128] : memref<16x32xf32, #tpu.memory_space<vmem>>, vector<8x16xf32>
    tpu.vector_store %arg11[%c8_127, %c16_128], %178 {strides = array<i32>} : memref<16x32xf32, #tpu.memory_space<vmem>>, vector<8x16xf32>,
    %c0_129 = arith.constant 0 : index
    %c0_130 = arith.constant 0 : index
    %180 = vector.load %arg11[%c0_129, %c0_130] : memref<16x32xf32, #tpu.memory_space<vmem>>, vector<16x32xf32>
    %c0_131 = arith.constant 0 : index
    %c0_132 = arith.constant 0 : index
    %181 = vector.load %arg5[%c0_131, %c0_132] : memref<32x32xf32, #tpu.memory_space<vmem>>, vector<32x32xf32>
    %cst_133 = arith.constant dense<0.000000e+00> : vector<16x32xf32>
    %182 = tpu.matmul %180, %181, %cst_133 {dimension_numbers = #tpu.dot_dimension_numbers<[1], [0], [0], [1], [0, 0, 1, 1], [], []>} : vector<16x32xf32>, vector<32x32xf32>, vector<16x32xf32> -> vector<16x32xf32>
    %183 = vector.broadcast %99 : vector<1x32xf32> to vector<16x32xf32>
    %184 = arith.addf %182, %183 : vector<16x32xf32>
    %185 = arith.addf %96, %184 : vector<16x32xf32>
    %cst_134 = arith.constant dense<0.000000e+00> : vector<16xf32>
    %186 = vector.multi_reduction <add>, %185, %cst_134 [1] : vector<16x32xf32> to vector<16xf32>
    %187 = vector.shape_cast %186 : vector<16xf32> to vector<16x1xf32>
    %cst_135 = arith.constant 3.200000e+01 : f32
    %188 = vector.broadcast %cst_135 : f32 to vector<16x1xf32>
    %189 = arith.divf %187, %188 : vector<16x1xf32>
    %190 = vector.broadcast %189 : vector<16x1xf32> to vector<16x32xf32>
    %191 = arith.subf %185, %190 : vector<16x32xf32>
    %192 = arith.mulf %191, %191 : vector<16x32xf32>
    %cst_136 = arith.constant dense<0.000000e+00> : vector<16xf32>
    %193 = vector.multi_reduction <add>, %192, %cst_136 [1] : vector<16x32xf32> to vector<16xf32>
    %194 = vector.shape_cast %193 : vector<16xf32> to vector<16x1xf32>
    %cst_137 = arith.constant 3.200000e+01 : f32
    %195 = vector.broadcast %cst_137 : f32 to vector<16x1xf32>
    %196 = arith.divf %194, %195 : vector<16x1xf32>
    %197 = vector.broadcast %189 : vector<16x1xf32> to vector<16x32xf32>
    %198 = arith.subf %185, %197 : vector<16x32xf32>
    %cst_138 = arith.constant 9.99999974E-6 : f32
    %199 = vector.broadcast %cst_138 : f32 to vector<16x1xf32>
    %200 = arith.addf %196, %199 : vector<16x1xf32>
    %201 = math.rsqrt %200 : vector<16x1xf32>
    %202 = vector.broadcast %201 : vector<16x1xf32> to vector<16x32xf32>
    %203 = arith.mulf %198, %202 : vector<16x32xf32>
    %204 = vector.broadcast %102 : vector<1x32xf32> to vector<16x32xf32>
    %205 = arith.mulf %203, %204 : vector<16x32xf32>
    %206 = vector.broadcast %103 : vector<1x32xf32> to vector<16x32xf32>
    %207 = arith.addf %205, %206 : vector<16x32xf32>
    %c0_139 = arith.constant 0 : index
    %c0_140 = arith.constant 0 : index
    %208 = vector.load %arg6[%c0_139, %c0_140] : memref<32x64xf32, #tpu.memory_space<vmem>>, vector<32x64xf32>
    %cst_141 = arith.constant dense<0.000000e+00> : vector<16x64xf32>
    %209 = tpu.matmul %207, %208, %cst_141 {dimension_numbers = #tpu.dot_dimension_numbers<[1], [0], [0], [1], [0, 0, 1, 1], [], []>} : vector<16x32xf32>, vector<32x64xf32>, vector<16x64xf32> -> vector<16x64xf32>
    %210 = vector.broadcast %100 : vector<1x64xf32> to vector<16x64xf32>
    %211 = arith.addf %209, %210 : vector<16x64xf32>
    %cst_142 = arith.constant 0.000000e+00 : f32
    %212 = vector.broadcast %cst_142 : f32 to vector<16x64xf32>
    %213 = arith.maximumf %211, %212 : vector<16x64xf32>
    %c0_143 = arith.constant 0 : index
    %c0_144 = arith.constant 0 : index
    %214 = vector.load %arg7[%c0_143, %c0_144] : memref<64x32xf32, #tpu.memory_space<vmem>>, vector<64x32xf32>
    %cst_145 = arith.constant dense<0.000000e+00> : vector<16x32xf32>
    %215 = tpu.matmul %213, %214, %cst_145 {dimension_numbers = #tpu.dot_dimension_numbers<[1], [0], [0], [1], [0, 0, 1, 1], [], []>} : vector<16x64xf32>, vector<64x32xf32>, vector<16x32xf32> -> vector<16x32xf32>
    %216 = vector.broadcast %101 : vector<1x32xf32> to vector<16x32xf32>
    %217 = arith.addf %215, %216 : vector<16x32xf32>
    %218 = arith.addf %207, %217 : vector<16x32xf32>
    %cst_146 = arith.constant dense<0.000000e+00> : vector<16xf32>
    %219 = vector.multi_reduction <add>, %218, %cst_146 [1] : vector<16x32xf32> to vector<16xf32>
    %220 = vector.shape_cast %219 : vector<16xf32> to vector<16x1xf32>
    %cst_147 = arith.constant 3.200000e+01 : f32
    %221 = vector.broadcast %cst_147 : f32 to vector<16x1xf32>
    %222 = arith.divf %220, %221 : vector<16x1xf32>
    %223 = vector.broadcast %222 : vector<16x1xf32> to vector<16x32xf32>
    %224 = arith.subf %218, %223 : vector<16x32xf32>
    %225 = arith.mulf %224, %224 : vector<16x32xf32>
    %cst_148 = arith.constant dense<0.000000e+00> : vector<16xf32>
    %226 = vector.multi_reduction <add>, %225, %cst_148 [1] : vector<16x32xf32> to vector<16xf32>
    %227 = vector.shape_cast %226 : vector<16xf32> to vector<16x1xf32>
    %cst_149 = arith.constant 3.200000e+01 : f32
    %228 = vector.broadcast %cst_149 : f32 to vector<16x1xf32>
    %229 = arith.divf %227, %228 : vector<16x1xf32>
    %230 = vector.broadcast %222 : vector<16x1xf32> to vector<16x32xf32>
    %231 = arith.subf %218, %230 : vector<16x32xf32>
    %cst_150 = arith.constant 9.99999974E-6 : f32
    %232 = vector.broadcast %cst_150 : f32 to vector<16x1xf32>
    %233 = arith.addf %229, %232 : vector<16x1xf32>
    %234 = math.rsqrt %233 : vector<16x1xf32>
    %235 = vector.broadcast %234 : vector<16x1xf32> to vector<16x32xf32>
    %236 = arith.mulf %231, %235 : vector<16x32xf32>
    %237 = vector.broadcast %102 : vector<1x32xf32> to vector<16x32xf32>
    %238 = arith.mulf %236, %237 : vector<16x32xf32>
    %239 = vector.broadcast %103 : vector<1x32xf32> to vector<16x32xf32>
    %240 = arith.addf %238, %239 : vector<16x32xf32>
    %c0_151 = arith.constant 0 : index
    %c0_152 = arith.constant 0 : index
    %241 = vector.load %arg9[%c0_151, %c0_152] : memref<16x32xf32, #tpu.memory_space<vmem>>, vector<16x32xf32>
    tpu.vector_store %arg9[%c0_151, %c0_152], %240 {strides = array<i32>} : memref<16x32xf32, #tpu.memory_space<vmem>>, vector<16x32xf32>,
    return
  }
  func.func @transform_0(%arg0: i32, %arg1: memref<2x8xi32, #tpu.memory_space<smem>>) -> (i32, i32) {
    %c0_i32 = arith.constant 0 : i32
    %c0_i32_0 = arith.constant 0 : i32
    %c0_i32_1 = arith.constant 0 : i32
    return %c0_i32, %c0_i32_0 : i32, i32
  }
  func.func @transform_1(%arg0: i32, %arg1: memref<2x8xi32, #tpu.memory_space<smem>>) -> (i32, i32) {
    %c0_i32 = arith.constant 0 : i32
    %c0_i32_0 = arith.constant 0 : i32
    %c0_i32_1 = arith.constant 0 : i32
    return %c0_i32, %c0_i32_0 : i32, i32
  }
  func.func @transform_2(%arg0: i32, %arg1: memref<2x8xi32, #tpu.memory_space<smem>>) -> (i32, i32) {
    %c0_i32 = arith.constant 0 : i32
    %c0_i32_0 = arith.constant 0 : i32
    %c0_i32_1 = arith.constant 0 : i32
    return %c0_i32, %c0_i32_0 : i32, i32
  }
  func.func @transform_3(%arg0: i32, %arg1: memref<2x8xi32, #tpu.memory_space<smem>>) -> (i32, i32) {
    %c0_i32 = arith.constant 0 : i32
    %c0_i32_0 = arith.constant 0 : i32
    %c0_i32_1 = arith.constant 0 : i32
    return %c0_i32, %c0_i32_0 : i32, i32
  }
  func.func @transform_4(%arg0: i32, %arg1: memref<2x8xi32, #tpu.memory_space<smem>>) -> (i32, i32) {
    %c0_i32 = arith.constant 0 : i32
    %c0_i32_0 = arith.constant 0 : i32
    %c0_i32_1 = arith.constant 0 : i32
    return %c0_i32, %c0_i32_0 : i32, i32
  }
  func.func @transform_5(%arg0: i32, %arg1: memref<2x8xi32, #tpu.memory_space<smem>>) -> (i32, i32) {
    %c0_i32 = arith.constant 0 : i32
    %c0_i32_0 = arith.constant 0 : i32
    %c0_i32_1 = arith.constant 0 : i32
    return %c0_i32, %c0_i32_0 : i32, i32
  }
  func.func @transform_6(%arg0: i32, %arg1: memref<2x8xi32, #tpu.memory_space<smem>>) -> (i32, i32) {
    %c0_i32 = arith.constant 0 : i32
    %c0_i32_0 = arith.constant 0 : i32
    %c0_i32_1 = arith.constant 0 : i32
    return %c0_i32, %c0_i32_0 : i32, i32
  }
  func.func @transform_7(%arg0: i32, %arg1: memref<2x8xi32, #tpu.memory_space<smem>>) -> (i32, i32) {
    %c0_i32 = arith.constant 0 : i32
    %c0_i32_0 = arith.constant 0 : i32
    %c0_i32_1 = arith.constant 0 : i32
    return %c0_i32, %c0_i32_0 : i32, i32
  }
}

</mosaic_0001>

<bundles_post_ra>
// kernel: encoder_forward.1
= control target key start
LH: loop header
LB: loop body
LE: loop exit
PB: predicated region body
PF: predicated region fallthrough
CT: control target
= control target key end

     0   :  { %s1965_s0 = inlined_call_operand.vmem [shape: s32[2,8], index: 0, kind: input, shape index: {}]   ;;  %s1966_s1 = inlined_call_operand.vmem [shape: f32[50,32], index: 1, kind: input, shape index: {}]   ;;  %s1967_s2 = inlined_call_operand.vmem [shape: f32[8,32], index: 2, kind: input, shape index: {}]   ;;  %s1968_s3 = inlined_call_operand.vmem [shape: f32[32,96], index: 3, kind: input, shape index: {}]   ;;  %s1969_s4 = inlined_call_operand.vmem [shape: f32[32,32], index: 4, kind: input, shape index: {}]   ;;  %s1970_s5 = inlined_call_operand.vmem [shape: f32[32,64], index: 5, kind: input, shape index: {}]   ;;  %s1971_s6 = inlined_call_operand.vmem [shape: f32[64,32], index: 6, kind: input, shape index: {}]   ;;  %s1972_s7 = inlined_call_operand.vmem [shape: f32[6,96], index: 7, kind: input, shape index: {}]   ;;  %s1973_s8 = inlined_call_operand.hbm [shape: f32[16,32], index: 8, kind: output, shape index: {}]  }
   0x1   :  { %s13_s29 = sshll.u32 %s1965_s0, 4  ;;  %s14_s29 = int_to_ptr.vmem [resolvable:$true] %s13_s29 }
   0x2   :  { %s1531_s30 = scalar_lea.vmem %s14_s29, 32  ;;  %p1536_p1 = scmp.lt.s32.totalorder %s14_s29, %s14_s29 }
   0x3   :  { %p1532_p0 = scmp.ne.s32.totalorder %s14_s29, %s1531_s30  ;;  %p1537_p2 = scmp.lt.s32.totalorder %s1531_s30, %s1531_s30 }
   0x5   :  { %p1538_p3 = por %p1537_p2, %p1536_p1 }
   0x7   :  { %p1539_p4 = pnand %p1538_p3, %p1532_p0 }
   0x9   :  { %1542 = shalt.err (!%p1539_p4)  }
   0xa   :  { %s1569_s9 = smov [#allocation5]  }
   0xb   :  { %16 = dma.vmem_to_smem %s14_s29, 32, %s1569_s9, [#allocation4] }
   0xc   :  { %1565 = dma.done.wait [#allocation4], 32 }
   0xd   :  { %1566 = vsyncadd [#allocation4], 4294967264 }
   0xe   :  { %18 = sfence }
   0xf   :  { %v134_v0 = vld [vmem:[%s1968_s3] sm:$0xff]  ;;  %v135_v1 = vld [vmem:[%s1968_s3 + $0x8] sm:$0xff]  ;;  %v136_v2 = vld [vmem:[%s1968_s3 + $0x10] sm:$0xff]  ;;  %s34_s15 = sld [smem:[#allocation5]]  ;;  %s1284_s18 = sld [smem:[#allocation5 + $0x1]]  ;;  %vm39_vm0 = vcmask 253952  }
  0x10   :  { %v1455_v3 = vpack.c.bf16 %v135_v1, %v134_v0  ;;  %v137_v4 = vld [vmem:[%s1968_s3 + $0x18] sm:$0xff]  ;;  %s1285_s19 = sld [smem:[#allocation5 + $0x2]]  ;;  %s1641_s20 = sld [smem:[#allocation5 + $0x3]]  ;;  %v37_v6 = vld [vmem:[%s1967_s2] sm:$0x1] }
  0x11   :  { %v1459_v5 = vpack.c.bf16 %v137_v4, %v136_v2  ;;  %s1643_s21 = sld [smem:[#allocation5 + $0x4]]  ;;  %s1648_s24 = sld [smem:[#allocation5 + $0x5]]  ;;  %v44_v7 = vld [vmem:[%s1967_s2 + $0x1] sm:$0x1]  ;;  %v50_v8 = vld [vmem:[%s1967_s2 + $0x2] sm:$0x1] }
  0x12   :  { %1456 = vmatprep.subr.bf16.mxu1 %v1455_v3  ;;  %s1653_s3 = sld [smem:[#allocation5 + $0x6]]  ;;  %s1655_s27 = sld [smem:[#allocation5 + $0x7]]  ;;  %v56_v9 = vld [vmem:[%s1967_s2 + $0x3] sm:$0x1]  ;;  %v62_v11 = vld [vmem:[%s1967_s2 + $0x4] sm:$0x1] }
  0x13   :  { %1458 = vmatpush3.bf16.msra.mxu1 %v1455_v3  ;;  %s1666_s13 = sld [smem:[#allocation5 + $0x80]]  ;;  %v68_v14 = vld [vmem:[%s1967_s2 + $0x5] sm:$0x1]  ;;  %v74_v17 = vld [vmem:[%s1967_s2 + $0x6] sm:$0x1]  ;;  %s1703_s25 = sld [smem:[#allocation5 + $0x83]] }
  0x14   :  { %1460 = vmatprep.subr.bf16.mxu1 %v1459_v5  ;;  %v80_v18 = vld [vmem:[%s1967_s2 + $0x7] sm:$0x1]  ;;  %v86_v25 = vld [vmem:[%s1967_s2] sm:$0x1]  ;;  %v92_v26 = vld [vmem:[%s1967_s2 + $0x1] sm:$0x1] }
  0x15   :  { %s35_s30 = scalar_lea.vmem %s1966_s1, %s34_s15  ;;  %s42_s16 = scalar_lea.vmem %s1966_s1, %s1284_s18  ;;  %v98_v33 = vld [vmem:[%s1967_s2 + $0x2] sm:$0x1]  ;;  %v104_v38 = vld [vmem:[%s1967_s2 + $0x3] sm:$0x1] }
  0x16   :  { %v36_v10 = vld [vmem:[%s35_s30] sm:$0x1]  ;;  %s1674_s15 = sld [smem:[#allocation5 + $0x81]]  ;;  %s48_s26 = scalar_lea.vmem %s1966_s1, %s1285_s19 }
  0x17   :  { %1462 = vmatpush3.bf16.msra.mxu1 %v1459_v5  ;;  %v38_v12 = vadd.f32 %v37_v6, %v36_v10  ;;  %v43_v13 = vld [vmem:[%s42_s16] sm:$0x1]  ;;  %s1682_s30 = sld [smem:[#allocation5 + $0x82]]  ;;  %s54_s10 = scalar_lea.vmem %s1966_s1, %s1641_s20 }
  0x18   :  { %v45_v15 = vadd.f32 %v44_v7, %v43_v13  ;;  %v49_v16 = vld [vmem:[%s48_s26] sm:$0x1]  ;;  %s60_s0 = scalar_lea.vmem %s1966_s1, %s1643_s21  ;;  %s66_s23 = scalar_lea.vmem %s1966_s1, %s1648_s24 }
  0x19   :  { %40 = vst.msk [vmem:[#allocation2] sm:$0x1] %vm39_vm0, %v38_v12  ;;  %v51_v19 = vadd.f32 %v50_v8, %v49_v16  ;;  %v55_v20 = vld [vmem:[%s54_s10] sm:$0x1]  ;;  %s72_s28 = scalar_lea.vmem %s1966_s1, %s1653_s3  ;;  %s78_s9 = scalar_lea.vmem %s1966_s1, %s1655_s27 }
  0x1a   :  { %v61_v21 = vld [vmem:[%s60_s0] sm:$0x1]  ;;  %46 = vst.msk [vmem:[#allocation2 + $0x1] sm:$0x1] %vm39_vm0, %v45_v15  ;;  %v57_v22 = vadd.f32 %v56_v9, %v55_v20  ;;  %s84_s14 = scalar_lea.vmem %s1966_s1, %s1666_s13  ;;  %s1725_s19 = sld [smem:[#allocation5 + $0x84]] }
  0x1b   :  { %v63_v23 = vadd.f32 %v62_v11, %v61_v21  ;;  %v67_v24 = vld [vmem:[%s66_s23] sm:$0x1]  ;;  %52 = vst.msk [vmem:[#allocation2 + $0x2] sm:$0x1] %vm39_vm0, %v51_v19  ;;  %s1736_s23 = sld [smem:[#allocation5 + $0x85]]  ;;  %s1298_s18 = sld [smem:[#allocation5 + $0x87]] }
  0x1c   :  { %v69_v27 = vadd.f32 %v68_v14, %v67_v24  ;;  %v73_v28 = vld [vmem:[%s72_s28] sm:$0x1]  ;;  %58 = vst.msk [vmem:[#allocation2 + $0x3] sm:$0x1] %vm39_vm0, %v57_v22  ;;  %s90_s17 = scalar_lea.vmem %s1966_s1, %s1674_s15  ;;  %s1297_s28 = sld [smem:[#allocation5 + $0x86]] }
  0x1d   :  { %v79_v29 = vld [vmem:[%s78_s9] sm:$0x1]  ;;  %64 = vst.msk [vmem:[#allocation2 + $0x4] sm:$0x1] %vm39_vm0, %v63_v23  ;;  %v75_v30 = vadd.f32 %v74_v17, %v73_v28  ;;  %s96_s26 = scalar_lea.vmem %s1966_s1, %s1682_s30  ;;  %s102_s11 = scalar_lea.vmem %s1966_s1, %s1703_s25 }
  0x1e   :  { %v81_v31 = vadd.f32 %v80_v18, %v79_v29  ;;  %v85_v32 = vld [vmem:[%s84_s14] sm:$0x1]  ;;  %70 = vst.msk [vmem:[#allocation2 + $0x5] sm:$0x1] %vm39_vm0, %v69_v27 }
  0x1f   :  { %v87_v34 = vadd.f32 %v86_v25, %v85_v32  ;;  %v91_v35 = vld [vmem:[%s90_s17] sm:$0x1]  ;;  %76 = vst.msk [vmem:[#allocation2 + $0x6] sm:$0x1] %vm39_vm0, %v75_v30 }
  0x20   :  { %82 = vst.msk [vmem:[#allocation2 + $0x7] sm:$0x1] %vm39_vm0, %v81_v31  ;;  %v93_v36 = vadd.f32 %v92_v26, %v91_v35  ;;  %v97_v37 = vld [vmem:[%s96_s26] sm:$0x1] }
  0x21   :  { %88 = vst.msk [vmem:[#allocation2 + $0x8] sm:$0x1] %vm39_vm0, %v87_v34  ;;  %v99_v39 = vadd.f32 %v98_v33, %v97_v37 }
  0x22   :  { %19 = vsyncpa [#allocation7], 0  ;;  %94 = vst.msk [vmem:[#allocation2 + $0x9] sm:$0x1] %vm39_vm0, %v93_v36  ;;  %v103_v40 = vld [vmem:[%s102_s11] sm:$0x1]  ;;  %s108_s3 = scalar_lea.vmem %s1966_s1, %s1725_s19  ;;  %s114_s17 = scalar_lea.vmem %s1966_s1, %s1736_s23  ;;  %v138_v57 = vlaneseq }
  0x23   :  { %v110_v41 = vld [vmem:[%s1967_s2 + $0x4] sm:$0x1]  ;;  %100 = vst.msk [vmem:[#allocation2 + $0xa] sm:$0x1] %vm39_vm0, %v99_v39  ;;  %v105_v42 = vadd.f32 %v104_v38, %v103_v40  ;;  %v116_v43 = vld [vmem:[%s1967_s2 + $0x5] sm:$0x1]  ;;  %s120_s21 = scalar_lea.vmem %s1966_s1, %s1297_s28  ;;  %s126_s9 = scalar_lea.vmem %s1966_s1, %s1298_s18 }
  0x24   :  { %v109_v44 = vld [vmem:[%s108_s3] sm:$0x1]  ;;  %v122_v45 = vld [vmem:[%s1967_s2 + $0x6] sm:$0x1]  ;;  %vm142_vm1 = vcmask 261120   ;;  %v1570_v56 = vmov 0.0  }
  0x25   :  { %106 = vst.msk [vmem:[#allocation2 + $0xb] sm:$0x1] %vm39_vm0, %v105_v42  ;;  %v111_v46 = vadd.f32 %v110_v41, %v109_v44  ;;  %v115_v47 = vld [vmem:[%s114_s17] sm:$0x1]  ;;  %v128_v48 = vld [vmem:[%s1967_s2 + $0x7] sm:$0x1]  ;;  %1374 = vmatprep.subr.mxu1 %v1570_v56  ;;  %1384 = vmatprep.subr.mxu0 %v1570_v56 }
  0x26   :  { %v117_v49 = vadd.f32 %v116_v43, %v115_v47  ;;  %v121_v50 = vld [vmem:[%s120_s21] sm:$0x1]  ;;  %v1796_v58 = vshrl.u32 %v138_v57, 7  ;;  %vm1571_vm2 = vmmov 0   ;;  %s1572_s28 = smov 112   ;;  %s1573_s18 = smov 96  }
  0x27   :  { %v1782_v51 = vld [vmem:[#allocation2] sm:$0xff]  ;;  %112 = vst.msk [vmem:[#allocation2 + $0xc] sm:$0x1] %vm39_vm0, %v111_v46  ;;  %v123_v52 = vadd.f32 %v122_v45, %v121_v50  ;;  %1386 = vmatprep.mubr.msk.f32.mxu0 %vm1571_vm2, %v1570_v56  ;;  %s1574_s10 = smov 80   ;;  %vm227_vm3 = vcmask 130048   ;;  %vm303_vm4 = vcmask 64512  }
  0x28   :  { %v127_v53 = vld [vmem:[%s126_s9] sm:$0x1]  ;;  %1371 = vmatprep.mubr.msk.f32.mxu1 %vm142_vm1, %v1782_v51  ;;  %118 = vst.msk [vmem:[#allocation2 + $0xd] sm:$0x1] %vm39_vm0, %v117_v49  ;;  %v140_v59 = vsub.s32 0, %v1796_v58  ;;  %s1576_s11 = smov 48  }
  0x29   :  { %v129_v54 = vadd.f32 %v128_v48, %v127_v53  ;;  %124 = vst.msk [vmem:[#allocation2 + $0xe] sm:$0x1] %vm39_vm0, %v123_v52  ;;  %v1806_v60 = vld [vmem:[%s1972_s7] sm:$0x3f]  ;;  %s1575_s7 = smov 64   ;;  %s1577_s16 = smov 16  }
  0x2a   :  { %v141_v61 = vrot.slane %v1806_v60, %v140_v59  ;;  %vm562_vm5 = vcmask 261248   ;;  %vm1136_vm6 = vcmask 523264  }
  0x2b   :  { %130 = vst.msk [vmem:[#allocation2 + $0xf] sm:$0x1] %vm39_vm0, %v129_v54 }
  0x32   :  { %v1790_v55 = vld [vmem:[#allocation2 + $0x8] sm:$0xff] }
  0x33   :  { %1372 = vmatmul.mubr.msk.f32.vlgmr.msra.gmra.mrb[0].mxu1 %vm142_vm1, %v1790_v55 }
  0x34   :  { %1376 = vmatprep.mubr.msk.f32.mxu1 %vm1571_vm2, %v1570_v56 }
 0x106   :  { %v1373_v62 = vpop.f32.mrb[0].mxu1 }
 0x107   :  { %v215_v63 = vpop.f32.mrb[1].mxu1  ;;  %v1813_v1 = vadd.f32 %v1373_v62, %v141_v61 }
 0x108   :  { %v1809_v0 = vadd.f32 %v215_v63, %v141_v61 }
 0x10a   :  { %392 = vrot.lane.b32.xlu1 %v1809_v0, %s1572_s28  ;;  %225 = vrot.lane.b32.xlu0 %v1809_v0, %s1573_s18 }
 0x10e   :  { %565 = vrot.lane.b32.xlu1 %v1813_v1, %s1573_s18  ;;  %394 = vrot.lane.b32.xlu0 %v1809_v0, %s1574_s10 }
 0x112   :  { %730 = vrot.lane.b32.xlu1 %v1813_v1, %s1572_s28  ;;  %732 = vrot.lane.b32.xlu0 %v1813_v1, %s1574_s10 }
 0x17c   :  { %v226_v2 = vpop.permute.xlu0 %225  ;;  %v393_v3 = vpop.permute.xlu1 %392 }
 0x17d   :  { %1375 = vmatpush3.xpose.msk.msra.mxu1 %vm227_vm3, %v226_v2  ;;  %v904_v2 = vld [vmem:[%s1969_s4 + $0x8] sm:$0xff] }
 0x17e   :  { %1379 = vmatprep.subr.mxu1 %v1570_v56 }
 0x180   :  { %1377 = vmatmul.mubr.msk.f32.vlgmr.msra.gmra.mrb[2].mxu1 %vm227_vm3, %v1809_v0  ;;  %v395_v4 = vpop.permute.xlu0 %394  ;;  %v566_v5 = vpop.permute.xlu1 %565 }
 0x181   :  { %1385 = vmatpush3.xpose.msk.msra.mxu0 %vm227_vm3, %v395_v4  ;;  %1381 = vmatprep.mubr.msk.f32.mxu1 %vm1571_vm2, %v1570_v56 }
 0x182   :  { %1394 = vmatprep.subr.mxu0 %v1570_v56 }
 0x184   :  { %1387 = vmatmul.mubr.msk.f32.vlgmr.msra.gmra.mrb[0].mxu0 %vm227_vm3, %v393_v3  ;;  %v733_v6 = vpop.permute.xlu0 %732  ;;  %v731_v7 = vpop.permute.xlu1 %730 }
 0x185   :  { %1395 = vmatpush3.xpose.msk.msra.mxu0 %vm227_vm3, %v566_v5  ;;  %1396 = vmatprep.mubr.msk.f32.mxu0 %vm1571_vm2, %v1570_v56  ;;  %v905_v5 = vld [vmem:[%s1969_s4 + $0x10] sm:$0xff] }
 0x186   :  { %1404 = vmatprep.subr.mxu0 %v1570_v56 }
 0x188   :  { %1397 = vmatmul.mubr.msk.f32.vlgmr.msra.gmra.mrb[2].mxu0 %vm227_vm3, %v1813_v1 }
 0x189   :  { %1405 = vmatpush3.xpose.msk.msra.mxu0 %vm227_vm3, %v733_v6  ;;  %1406 = vmatprep.mubr.msk.f32.mxu0 %vm1571_vm2, %v1570_v56 }
 0x18c   :  { %1407 = vmatmul.mubr.msk.f32.vlgmr.msra.gmra.mrb[4].mxu0 %vm227_vm3, %v731_v7 }
 0x253   :  { %v298_v8 = vpop.f32.mrb[2].mxu1 }
 0x254   :  { %v302_v9 = vmul.f32 0.25, %v298_v8  ;;  %v1378_v10 = vpop.f32.mrb[3].mxu1 }
 0x256   :  { %v304_v11 = vsel %vm303_vm4, %v302_v9, -inf }
 0x257   :  { %305 = vmax.xlane.f32.xlu0 %v304_v11  ;;  %v466_v12 = vpop.f32.mrb[0].mxu0 }
 0x258   :  { %v470_v13 = vmul.f32 0.25, %v466_v12  ;;  %v1388_v14 = vpop.f32.mrb[1].mxu0 }
 0x25a   :  { %v471_v15 = vsel %vm303_vm4, %v470_v13, -inf }
 0x25b   :  { %472 = vmax.xlane.f32.xlu1 %v471_v15  ;;  %v637_v16 = vpop.f32.mrb[2].mxu0 }
 0x25c   :  { %v641_v17 = vmul.f32 0.25, %v637_v16  ;;  %v1398_v18 = vpop.f32.mrb[3].mxu0 }
 0x25d   :  { %v909_v18 = vsub.s32 1, %v1796_v58 }
 0x25e   :  { %v642_v19 = vsel %vm303_vm4, %v641_v17, -inf }
 0x25f   :  { %643 = vmax.xlane.f32.xlu0 %v642_v19  ;;  %v804_v20 = vpop.f32.mrb[4].mxu0  ;;  %v910_v19 = vrot.slane %v1806_v60, %v909_v18 }
 0x260   :  { %v808_v21 = vmul.f32 0.25, %v804_v20  ;;  %v1408_v22 = vpop.f32.mrb[5].mxu0 }
 0x262   :  { %v809_v23 = vsel %vm303_vm4, %v808_v21, -inf }
 0x263   :  { %810 = vmax.xlane.f32.xlu0 %v809_v23 }
 0x26c   :  { %315 = vrot.lane.b32.xlu1 %v1809_v0, %s1575_s7 }
 0x2e4   :  { %v306_v24 = vpop.xlane.xlu0 %305 }
 0x2e5   :  { %v307_v25 = vsub.f32 %v302_v9, %v306_v24 }
 0x2e7   :  { %v308_v26 = vmul.f32 1.442695, %v307_v25 }
 0x2e8   :  { %v473_v27 = vpop.xlane.xlu1 %472 }
 0x2e9   :  { %1507 = vpow2.f32 %v308_v26  ;;  %v474_v28 = vsub.f32 %v470_v13, %v473_v27 }
 0x2eb   :  { %v475_v29 = vmul.f32 1.442695, %v474_v28 }
 0x2ec   :  { %v316_v30 = vpop.permute.xlu1 %315  ;;  %v644_v31 = vpop.xlane.xlu0 %643 }
 0x2ed   :  { %1509 = vpow2.f32 %v475_v29  ;;  %v645_v32 = vsub.f32 %v641_v17, %v644_v31  ;;  %1380 = vmatpush3.msra.mxu1 %v316_v30 }
 0x2ee   :  { %1389 = vmatprep.subr.mxu1 %v1570_v56 }
 0x2ef   :  { %v646_v33 = vmul.f32 1.442695, %v645_v32 }
 0x2f0   :  { %v811_v34 = vpop.xlane.xlu0 %810 }
 0x2f1   :  { %1511 = vpow2.f32 %v646_v33  ;;  %v812_v35 = vsub.f32 %v808_v21, %v811_v34 }
 0x2f3   :  { %v1508_v36 = vpop.eup %1507  ;;  %v813_v37 = vmul.f32 1.442695, %v812_v35 }
 0x2f4   :  { %v310_v38 = vsel %vm303_vm4, %v1508_v36, 0.0 }
 0x2f5   :  { %1513 = vpow2.f32 %v813_v37  ;;  %311 = vadd.xlane.f32.xlu1 %v310_v38  ;;  %v1034_v37 = vld [vmem:[%s1970_s5 + $0x8] sm:$0xff] }
 0x2f7   :  { %v1510_v39 = vpop.eup %1509 }
 0x2f8   :  { %v477_v40 = vsel %vm303_vm4, %v1510_v39, 0.0 }
 0x2f9   :  { %478 = vadd.xlane.f32.xlu0 %v477_v40  ;;  %v1036_v40 = vld [vmem:[%s1970_s5 + $0x18] sm:$0xff] }
 0x2fb   :  { %v1512_v41 = vpop.eup %1511 }
 0x2fc   :  { %v648_v42 = vsel %vm303_vm4, %v1512_v41, 0.0 }
 0x2fd   :  { %649 = vadd.xlane.f32.xlu1 %v648_v42  ;;  %v1124_v42 = vld [vmem:[%s1971_s6] sm:$0xff] }
 0x2ff   :  { %v1514_v43 = vpop.eup %1513 }
 0x300   :  { %v815_v44 = vsel %vm303_vm4, %v1514_v43, 0.0 }
 0x301   :  { %816 = vadd.xlane.f32.xlu0 %v815_v44  ;;  %v1126_v44 = vld [vmem:[%s1971_s6 + $0x10] sm:$0xff] }
 0x30e   :  { %653 = vrot.lane.b32.xlu1 %v1813_v1, %s1575_s7 }
 0x312   :  { %820 = vrot.lane.b32.xlu1 %v1813_v1, %s1576_s11  ;;  %v903_v1 = vld [vmem:[%s1969_s4] sm:$0xff] }
 0x313   :  { %v1463_v3 = vpack.c.bf16 %v904_v2, %v903_v1 }
 0x315   :  { %1464 = vmatprep.subr.bf16.mxu0 %v1463_v3 }
 0x316   :  { %1466 = vmatpush3.bf16.msra.mxu0 %v1463_v3 }
 0x317   :  { %482 = vrot.lane.b32.xlu0 %v1809_v0, %s1576_s11 }
 0x382   :  { %v312_v45 = vpop.xlane.xlu1 %311 }
 0x383   :  { %1515 = vrcp.f32 %v312_v45 }
 0x386   :  { %v479_v46 = vpop.xlane.xlu0 %478 }
 0x387   :  { %1517 = vrcp.f32 %v479_v46  ;;  %v1127_v46 = vld [vmem:[%s1971_s6 + $0x18] sm:$0xff] }
 0x38a   :  { %v650_v47 = vpop.xlane.xlu1 %649 }
 0x38b   :  { %1519 = vrcp.f32 %v650_v47  ;;  %v1483_v47 = vpack.c.bf16 %v1127_v46, %v1126_v44 }
 0x38d   :  { %v1516_v48 = vpop.eup %1515 }
 0x38e   :  { %v314_v49 = vmul.f32 %v1516_v48, %v1508_v36  ;;  %v817_v50 = vpop.xlane.xlu0 %816  ;;  %v654_v54 = vpop.permute.xlu1 %653  ;;  %v1128_v48 = vld [vmem:[%s1971_s6 + $0x20] sm:$0xff] }
 0x38f   :  { %1521 = vrcp.f32 %v817_v50 }
 0x390   :  { %1382 = vmatmul.mubr.msk.f32.vlgmr.msra.gmra.mrb[4].mxu1 %vm303_vm4, %v314_v49  ;;  %v1129_v49 = vld [vmem:[%s1971_s6 + $0x28] sm:$0xff] }
 0x391   :  { %v1518_v52 = vpop.eup %1517  ;;  %1391 = vmatprep.mubr.msk.f32.mxu1 %vm1571_vm2, %v1570_v56  ;;  %v1487_v50 = vpack.c.bf16 %v1129_v49, %v1128_v48 }
 0x392   :  { %v481_v53 = vmul.f32 %v1518_v52, %v1510_v39  ;;  %v483_v57 = vpop.permute.xlu0 %482  ;;  %v821_v62 = vpop.permute.xlu1 %820  ;;  %v1035_v39 = vld [vmem:[%s1970_s5 + $0x10] sm:$0xff] }
 0x393   :  { %1390 = vmatpush3.msra.mxu1 %v483_v57 }
 0x394   :  { %1392 = vmatmul.mubr.msk.f32.vlgmr.msra.gmra.mrb[6].mxu1 %vm303_vm4, %v481_v53  ;;  %1399 = vmatprep.subr.mxu1 %v1570_v56 }
 0x395   :  { %v1520_v59 = vpop.eup %1519  ;;  %1400 = vmatpush3.msra.mxu1 %v654_v54  ;;  %1401 = vmatprep.mubr.msk.f32.mxu1 %vm1571_vm2, %v1570_v56 }
 0x396   :  { %v652_v61 = vmul.f32 %v1520_v59, %v1512_v41  ;;  %1409 = vmatprep.subr.mxu1 %v1570_v56  ;;  %v1475_v41 = vpack.c.bf16 %v1036_v40, %v1035_v39 }
 0x398   :  { %1402 = vmatmul.mubr.msk.f32.vlgmr.msra.gmra.mrb[8].mxu1 %vm303_vm4, %v652_v61 }
 0x399   :  { %v1522_v63 = vpop.eup %1521  ;;  %1410 = vmatpush3.msra.mxu1 %v821_v62  ;;  %1411 = vmatprep.mubr.msk.f32.mxu1 %vm1571_vm2, %v1570_v56  ;;  %v906_v56 = vld [vmem:[%s1969_s4 + $0x18] sm:$0xff]  ;;  %v1023_v62 = vsub.s32 4, %v1796_v58 }
 0x39a   :  { %v819_v0 = vmul.f32 %v1522_v63, %v1514_v43  ;;  %v1467_v7 = vpack.c.bf16 %v906_v56, %v905_v5  ;;  %v1125_v43 = vld [vmem:[%s1971_s6 + $0x8] sm:$0xff]  ;;  %v1029_v63 = vsub.s32 5, %v1796_v58 }
 0x39b   :  { %v1479_v45 = vpack.c.bf16 %v1125_v43, %v1124_v42 }
 0x39c   :  { %1412 = vmatmul.mubr.msk.f32.vlgmr.msra.gmra.mrb[10].mxu1 %vm303_vm4, %v819_v0  ;;  %1468 = vmatprep.subr.bf16.mxu0 %v1467_v7  ;;  %v1922_v0 = vrot.slane %v1806_v60, %v1023_v62  ;;  %v1925_v3 = vrot.slane %v1806_v60, %v1029_v63 }
 0x39d   :  { %1470 = vmatpush3.bf16.msra.mxu0 %v1467_v7 }
 0x39e   :  { %1480 = vmatprep.subr.bf16.mxu0 %v1479_v45 }
 0x463   :  { %v387_v4 = vpop.f32.mrb[4].mxu1 }
 0x464   :  { %391 = vst.msk [vmem:[#allocation3] sm:$0xff] %vm227_vm3, %v387_v4  ;;  %v1383_v6 = vpop.f32.mrb[5].mxu1 }
 0x467   :  { %v554_v8 = vpop.f32.mrb[6].mxu1 }
 0x468   :  { %559 = vrot.lane.b32.xlu0 %v554_v8, %s1577_s16  ;;  %v1393_v9 = vpop.f32.mrb[7].mxu1 }
 0x469   :  { %v1130_v9 = vld [vmem:[%s1971_s6 + $0x30] sm:$0xff] }
 0x46b   :  { %v725_v10 = vpop.f32.mrb[8].mxu1 }
 0x46c   :  { %729 = vst.msk [vmem:[#allocation3 + $0x8] sm:$0xff] %vm227_vm3, %v725_v10  ;;  %v1403_v11 = vpop.f32.mrb[9].mxu1  ;;  %v1131_v10 = vld [vmem:[%s1971_s6 + $0x38] sm:$0xff]  ;;  %s1578_s6 = smov [#allocation6]  }
 0x46d   :  { %v1491_v11 = vpack.c.bf16 %v1131_v10, %v1130_v9  ;;  %s1257_s3 = sshll.u32 %s1578_s6, 4  ;;  %s1258_s3 = int_to_ptr.vmem [resolvable:$true] %s1257_s3 }
 0x46e   :  { %s1543_s14 = scalar_lea.vmem %s1258_s3, 256  ;;  %p1548_p6 = scmp.lt.s32.totalorder %s1258_s3, %s1258_s3 }
 0x46f   :  { %v892_v12 = vpop.f32.mrb[10].mxu1  ;;  %p1544_p5 = scmp.ne.s32.totalorder %s1258_s3, %s1543_s14  ;;  %p1549_p7 = scmp.lt.s32.totalorder %s1543_s14, %s1543_s14 }
 0x470   :  { %897 = vrot.lane.b32.xlu1 %v892_v12, %s1577_s16  ;;  %v1413_v13 = vpop.f32.mrb[11].mxu1  ;;  %v1039_v12 = vsub.s32 2, %v1796_v58 }
 0x471   :  { %p1550_p8 = por %p1549_p7, %p1548_p6 }
 0x472   :  { %v1040_v13 = vrot.slane %v1806_v60, %v1039_v12 }
 0x473   :  { %p1551_p9 = pnand %p1550_p8, %p1544_p5 }
 0x4da   :  { %v560_v14 = vpop.permute.xlu0 %559 }
 0x4db   :  { %563 = vst.msk [vmem:[#allocation3] sm:$0xff] %vm562_vm5, %v560_v14 }
 0x4e2   :  { %v898_v15 = vpop.permute.xlu1 %897  ;;  %v901_v16 = vld [vmem:[#allocation3] sm:$0xff] }
 0x4e3   :  { %900 = vst.msk [vmem:[#allocation3 + $0x8] sm:$0xff] %vm562_vm5, %v898_v15  ;;  %1422 = vmatprep.mubr.msk.f32.mxu0 %vm142_vm1, %v901_v16 }
 0x4ea   :  { %v902_v17 = vld [vmem:[#allocation3 + $0x8] sm:$0xff] }
 0x4eb   :  { %1423 = vmatmul.mubr.msk.f32.vlgmr.msra.gmra.mrb[6].mxu0 %vm142_vm1, %v902_v17 }
 0x4ec   :  { %1482 = vmatpush3.bf16.msra.mxu0 %v1479_v45 }
 0x4ed   :  { %1484 = vmatprep.subr.bf16.mxu0 %v1483_v47 }
 0x4f0   :  { %1486 = vmatpush3.bf16.msra.mxu0 %v1483_v47 }
 0x4f1   :  { %1488 = vmatprep.subr.bf16.mxu0 %v1487_v50 }
 0x4f4   :  { %1490 = vmatpush3.bf16.msra.mxu0 %v1487_v50 }
 0x4f5   :  { %1492 = vmatprep.subr.bf16.mxu0 %v1491_v11 }
 0x4f8   :  { %1494 = vmatpush3.bf16.msra.mxu0 %v1491_v11 }
 0x5be   :  { %v1424_v20 = vpop.f32.mrb[6].mxu0 }
 0x5bf   :  { %v989_v21 = vadd.f32 %v1424_v20, %v910_v19  ;;  %v983_v22 = vpop.f32.mrb[7].mxu0  ;;  %v1134_v20 = vsub.s32 3, %v1796_v58 }
 0x5c0   :  { %v984_v23 = vadd.f32 %v983_v22, %v910_v19 }
 0x5c1   :  { %v993_v24 = vadd.f32 %v989_v21, %v1790_v55  ;;  %v1135_v21 = vrot.slane %v1806_v60, %v1134_v20 }
 0x5c2   :  { %v992_v25 = vadd.f32 %v984_v23, %v1782_v51  ;;  %v1033_v51 = vld [vmem:[%s1970_s5] sm:$0xff] }
 0x5c3   :  { %v997_v26 = vsel %vm142_vm1, %v993_v24, 0.0  ;;  %v1471_v38 = vpack.c.bf16 %v1034_v37, %v1033_v51 }
 0x5c4   :  { %998 = vadd.xlane.f32.xlu1 %v997_v26  ;;  %v994_v27 = vsel %vm142_vm1, %v992_v25, 0.0 }
 0x5c5   :  { %995 = vadd.xlane.f32.xlu0 %v994_v27  ;;  %1472 = vmatprep.subr.bf16.mxu1 %v1471_v38 }
 0x5c6   :  { %1474 = vmatpush3.bf16.msra.mxu1 %v1471_v38 }
 0x5c7   :  { %1476 = vmatprep.subr.bf16.mxu1 %v1475_v41 }
 0x5ca   :  { %1478 = vmatpush3.bf16.msra.mxu1 %v1475_v41 }
 0x651   :  { %v999_v28 = vpop.xlane.xlu1 %998 }
 0x652   :  { %v1002_v29 = vmul.f32 0.03125, %v999_v28  ;;  %v996_v30 = vpop.xlane.xlu0 %995 }
 0x653   :  { %v1001_v31 = vmul.f32 0.03125, %v996_v30 }
 0x654   :  { %v1004_v32 = vsub.f32 %v993_v24, %v1002_v29 }
 0x655   :  { %v1003_v33 = vsub.f32 %v992_v25, %v1001_v31 }
 0x656   :  { %v1006_v36 = vmul.f32 %v1004_v32, %v1004_v32 }
 0x657   :  { %v1005_v34 = vmul.f32 %v1003_v33, %v1003_v33 }
 0x658   :  { %v1010_v55 = vsel %vm142_vm1, %v1006_v36, 0.0 }
 0x659   :  { %v1007_v35 = vsel %vm142_vm1, %v1005_v34, 0.0 }
 0x65a   :  { %1008 = vadd.xlane.f32.xlu0 %v1007_v35 }
 0x65e   :  { %1011 = vadd.xlane.f32.xlu0 %v1010_v55 }
 0x6e7   :  { %v1009_v52 = vpop.xlane.xlu0 %1008 }
 0x6e8   :  { %v1013_v53 = vmul.f32 0.03125, %v1009_v52 }
 0x6ea   :  { %v1015_v54 = vadd.f32 1e-05, %v1013_v53 }
 0x6eb   :  { %v1012_v57 = vpop.xlane.xlu0 %1011 }
 0x6ec   :  { %1523 = vrsqrt.f32 %v1015_v54  ;;  %v1014_v59 = vmul.f32 0.03125, %v1012_v57 }
 0x6ee   :  { %v1016_v61 = vadd.f32 1e-05, %v1014_v59 }
 0x6f0   :  { %1525 = vrsqrt.f32 %v1016_v61 }
 0x6f6   :  { %v1524_v1 = vpop.eup %1523 }
 0x6f7   :  { %v1019_v2 = vmul.f32 %v1524_v1, %v1003_v33 }
 0x6f9   :  { %v1025_v4 = vmul.f32 %v1922_v0, %v1019_v2 }
 0x6fa   :  { %v1526_v5 = vpop.eup %1525 }
 0x6fb   :  { %v1020_v56 = vmul.f32 %v1526_v5, %v1004_v32  ;;  %v1031_v6 = vadd.f32 %v1925_v3, %v1025_v4 }
 0x6fd   :  { %1433 = vmatprep.mubr.msk.f32.mxu1 %vm142_vm1, %v1031_v6  ;;  %v1026_v7 = vmul.f32 %v1922_v0, %v1020_v56 }
 0x6ff   :  { %v1032_v8 = vadd.f32 %v1925_v3, %v1026_v7 }
 0x701   :  { %1434 = vmatmul.mubr.msk.f32.vlgmr.msra.gmra.mrb[12].mxu1 %vm142_vm1, %v1032_v8 }
 0x7d4   :  { %v1435_v14 = vpop.f32.mrb[12].mxu1 }
 0x7d5   :  { %v1119_v15 = vadd.f32 %v1435_v14, %v1040_v13  ;;  %v1113_v16 = vpop.f32.mrb[13].mxu1 }
 0x7d6   :  { %v1114_v17 = vadd.f32 %v1113_v16, %v1040_v13 }
 0x7d7   :  { %v1123_v19 = vmax.f32 %v1119_v15, 0.0 }
 0x7d8   :  { %v1122_v18 = vmax.f32 %v1114_v17, 0.0 }
 0x7da   :  { %1452 = vmatprep.mubr.msk.f32.mxu0 %vm1136_vm6, %v1122_v18 }
 0x7db   :  { %1453 = vmatmul.mubr.msk.f32.vlgmr.msra.gmra.mrb[8].mxu0 %vm1136_vm6, %v1123_v19 }
 0x8ae   :  { %v1454_v22 = vpop.f32.mrb[8].mxu0 }
 0x8af   :  { %v1215_v23 = vadd.f32 %v1454_v22, %v1135_v21  ;;  %v1209_v24 = vpop.f32.mrb[9].mxu0 }
 0x8b0   :  { %v1210_v25 = vadd.f32 %v1209_v24, %v1135_v21 }
 0x8b1   :  { %v1219_v26 = vadd.f32 %v1215_v23, %v1032_v8 }
 0x8b2   :  { %v1218_v27 = vadd.f32 %v1210_v25, %v1031_v6 }
 0x8b3   :  { %v1223_v28 = vsel %vm142_vm1, %v1219_v26, 0.0 }
 0x8b4   :  { %1224 = vadd.xlane.f32.xlu0 %v1223_v28  ;;  %v1220_v29 = vsel %vm142_vm1, %v1218_v27, 0.0 }
 0x8b5   :  { %1221 = vadd.xlane.f32.xlu1 %v1220_v29 }
 0x941   :  { %v1225_v30 = vpop.xlane.xlu0 %1224 }
 0x942   :  { %v1227_v31 = vmul.f32 0.03125, %v1225_v30  ;;  %v1222_v32 = vpop.xlane.xlu1 %1221 }
 0x943   :  { %v1226_v33 = vmul.f32 0.03125, %v1222_v32 }
 0x944   :  { %v1229_v34 = vsub.f32 %v1219_v26, %v1227_v31 }
 0x945   :  { %v1228_v58 = vsub.f32 %v1218_v27, %v1226_v33 }
 0x946   :  { %v1231_v35 = vmul.f32 %v1229_v34, %v1229_v34 }
 0x947   :  { %v1230_v60 = vmul.f32 %v1228_v58, %v1228_v58 }
 0x948   :  { %v1235_v36 = vsel %vm142_vm1, %v1231_v35, 0.0 }
 0x949   :  { %1236 = vadd.xlane.f32.xlu0 %v1235_v36  ;;  %v1232_v55 = vsel %vm142_vm1, %v1230_v60, 0.0 }
 0x94a   :  { %1233 = vadd.xlane.f32.xlu1 %v1232_v55 }
 0x9d6   :  { %v1237_v51 = vpop.xlane.xlu0 %1236 }
 0x9d7   :  { %v1239_v37 = vmul.f32 0.03125, %v1237_v51  ;;  %v1234_v38 = vpop.xlane.xlu1 %1233 }
 0x9d8   :  { %v1238_v39 = vmul.f32 0.03125, %v1234_v38 }
 0x9d9   :  { %v1241_v40 = vadd.f32 1e-05, %v1239_v37 }
 0x9da   :  { %v1240_v41 = vadd.f32 1e-05, %v1238_v39 }
 0x9db   :  { %1527 = vrsqrt.f32 %v1241_v40 }
 0x9dc   :  { %1529 = vrsqrt.f32 %v1240_v41 }
 0x9e5   :  { %v1528_v42 = vpop.eup %1527 }
 0x9e6   :  { %v1530_v43 = vpop.eup %1529  ;;  %v1245_v44 = vmul.f32 %v1528_v42, %v1229_v34 }
 0x9e7   :  { %v1244_v45 = vmul.f32 %v1530_v43, %v1228_v58 }
 0x9e8   :  { %v1247_v46 = vmul.f32 %v1245_v44, %v1922_v0 }
 0x9e9   :  { %v1246_v47 = vmul.f32 %v1244_v45, %v1922_v0 }
 0x9ea   :  { %v1249_v48 = vadd.f32 %v1247_v46, %v1925_v3 }
 0x9eb   :  { %v1248_v49 = vadd.f32 %v1246_v47, %v1925_v3 }
 0x9ec   :  { %1251 = vst.msk [vmem:[#allocation6 + $0x8] sm:$0xff] %vm142_vm1, %v1249_v48 }
 0x9ed   :  { %1250 = vst.msk [vmem:[#allocation6] sm:$0xff] %vm142_vm1, %v1248_v49 }
 0x9ee   :  { %1554 = shalt.err (!%p1551_p9)
}
 0x9ef   :  { %s1555_s16 = scalar_lea.hbm %s1973_s8, 256 }
 0x9f0   :  { %p1556_p10 = scmp.ne.s32.totalorder %s1973_s8, %s1555_s16  ;;  %p1559_p11 = scmp.lt.u32.totalorder %s1555_s16, %s1973_s8 }
 0x9f2   :  { %p1561_p12 = pnand %p1559_p11, %p1556_p10 }
 0x9f4   :  { %1564 = shalt.err (!%p1561_p12)
}
 0x9f5   :  { %s1579_s13 = smov 128   ;;  %s1580_s19 = smov 8  }
 0x9f6   :  { %1263 = dma.vmem_to_hbm [thread:$0]  %s1258_s3, 256, %s1973_s8, [#allocation7], %s1579_s13, %s1579_s13, %s1580_s19  }
 0x9f7   :  { %1567 = dma.done.wait [#allocation7], 256  }
 0x9f8   :  { %1568 = vsyncadd [#allocation7], 4294967040 }
 0x9f9   :  { %1267 = vsyncpa [#allocation7], 1 }

</bundles_post_ra>
